<compile_context>
chip_gen: v7x
topology: tpu7x:2x2x1
jax: 0.10.0
libtpu: 0.0.40
codegen_flags: <defaults>
</compile_context>

<pallas_src>
import math
from functools import partial

import jax
import jax.numpy as jnp
import numpy as np
from jax.experimental import pallas as pl
from jax.experimental.pallas import tpu as pltpu

# Small, module-consistent shapes
D_MODEL = 32
NHEAD = 4
NUM_LAYERS = 2
DIM_FF = 64
NUM_CLASSES = 5
BATCH = 2
SEQ = 8
EPS = 1e-5
HEAD_PAD = 128          # lane-dense classifier output width (>= NUM_CLASSES)


# ----------------------------- Pallas kernel ------------------------------- #

def _fused_transformer_kernel(x_ref, wqkv_ref, bqkv_ref, wo_ref, bo_ref,
                              ln1w_ref, ln1b_ref, w1_ref, b1_ref, w2_ref, b2_ref,
                              ln2w_ref, ln2b_ref, hw_ref, hb_ref, o_ref,
                              *, nhead, num_layers):
    """Whole TransformerClassifier forward for the full (B, S, D) batch."""
    B, S, D = x_ref.shape
    hd = D // nhead
    scale = 1.0 / math.sqrt(hd)

    # Flatten (B, S, D) -> (B*S, D): leading-dim merge, layout no-op.
    xf = x_ref[...].reshape(B * S, D)

    for l in range(num_layers):                       # static unroll over layers
        # Hoist per-layer weight reads (read once per layer, not per use).
        wqkv = wqkv_ref[l]
        bqkv = bqkv_ref[l]
        wo = wo_ref[l]
        bo = bo_ref[l]
        ln1w = ln1w_ref[l]
        ln1b = ln1b_ref[l]
        w1 = w1_ref[l]
        b1 = b1_ref[l]
        w2 = w2_ref[l]
        b2 = b2_ref[l]
        ln2w = ln2w_ref[l]
        ln2b = ln2b_ref[l]

        # --- multi-head self-attention --------------------------------------
        qkv = jnp.dot(xf, wqkv, preferred_element_type=jnp.float32) + bqkv  # (B*S, 3D)

        def heads_of(col0):
            # Build a (nhead*B, S, hd) tensor (index = h*B + b) from lane slices;
            # the reshapes only split/merge leading (sublane-group) dims.
            parts = [qkv[:, col0 + h * hd: col0 + (h + 1) * hd].reshape(B, S, hd)
                     for h in range(nhead)]
            return jnp.concatenate(parts, axis=0)

        qh = heads_of(0) * scale        # (H*B, S, hd)
        kh = heads_of(D)
        vh = heads_of(2 * D)

        # Batched contractions over (head, batch).
        s = jnp.einsum('bqd,bkd->bqk', qh, kh,
                       preferred_element_type=jnp.float32)          # (H*B, S, S)
        s = s - jnp.max(s, axis=-1, keepdims=True)
        p = jnp.exp(s)
        p = p / jnp.sum(p, axis=-1, keepdims=True)
        a = jnp.einsum('bqk,bkd->bqd', p, vh,
                       preferred_element_type=jnp.float32)          # (H*B, S, hd)

        # Back to (B*S, D): head h occupies lane block [h*hd, (h+1)*hd).
        attn = jnp.concatenate(
            [a[h * B:(h + 1) * B].reshape(B * S, hd) for h in range(nhead)],
            axis=-1)
        attn = jnp.dot(attn, wo, preferred_element_type=jnp.float32) + bo

        # --- residual + LayerNorm1 -------------------------------------------
        y = xf + attn
        mu = jnp.mean(y, axis=-1, keepdims=True)
        var = jnp.mean(jnp.square(y - mu), axis=-1, keepdims=True)
        y = (y - mu) * jax.lax.rsqrt(var + EPS) * ln1w + ln1b

        # --- feed-forward (relu) ----------------------------------------------
        h1 = jnp.maximum(
            jnp.dot(y, w1, preferred_element_type=jnp.float32) + b1, 0.0)
        ff = jnp.dot(h1, w2, preferred_element_type=jnp.float32) + b2

        # --- residual + LayerNorm2 -------------------------------------------
        z = y + ff
        mu2 = jnp.mean(z, axis=-1, keepdims=True)
        var2 = jnp.mean(jnp.square(z - mu2), axis=-1, keepdims=True)
        xf = (z - mu2) * jax.lax.rsqrt(var2 + EPS) * ln2w + ln2b

    # Classifier head applied to all B*S tokens so the store is lane-dense
    # (B*S, 128); last-token + NUM_CLASSES slicing happens outside the kernel.
    o_ref[...] = (jnp.dot(xf, hw_ref[...], preferred_element_type=jnp.float32)
                  + hb_ref[...])


# ------------------------------ wrapper ------------------------------------- #

_PARAM_ORDER = ("wqkv", "bqkv", "wo", "bo", "ln1w", "ln1b",
                "w1", "b1", "w2", "b2", "ln2w", "ln2b", "hw", "hb")


def _full_spec(shape):
    nd = len(shape)
    return pl.BlockSpec(shape, lambda i, _nd=nd: (0,) * _nd)


@jax.jit
def transformer_classifier(x, params):
    B, S, D = x.shape
    weights = [params[k] for k in _PARAM_ORDER]

    out = pl.pallas_call(
        partial(_fused_transformer_kernel, nhead=NHEAD, num_layers=NUM_LAYERS),
        out_shape=jax.ShapeDtypeStruct((B * S, HEAD_PAD), jnp.float32),
        grid=(1,),
        in_specs=[_full_spec(x.shape)] + [_full_spec(w.shape) for w in weights],
        out_specs=_full_spec((B * S, HEAD_PAD)),
        compiler_params=pltpu.CompilerParams(
            dimension_semantics=("arbitrary",)),
    )(x, *weights)

    # last token of each sequence, first NUM_CLASSES (real) logits
    return out.reshape(B, S, HEAD_PAD)[:, -1, :NUM_CLASSES]


# ------------------------- deterministic parameters ------------------------ #

def init_params(key):
    def nrm(k, shape):
        return 0.02 * jax.random.normal(k, shape, jnp.float32)

    keys = jax.random.split(key, 4 * NUM_LAYERS + 1)
    p = dict(
        wqkv=jnp.stack([nrm(keys[4 * l + 0], (D_MODEL, 3 * D_MODEL))
                        for l in range(NUM_LAYERS)]),
        bqkv=jnp.zeros((NUM_LAYERS, 1, 3 * D_MODEL), jnp.float32),
        wo=jnp.stack([nrm(keys[4 * l + 1], (D_MODEL, D_MODEL))
                      for l in range(NUM_LAYERS)]),
        bo=jnp.zeros((NUM_LAYERS, 1, D_MODEL), jnp.float32),
        ln1w=jnp.ones((NUM_LAYERS, 1, D_MODEL), jnp.float32),
        ln1b=jnp.zeros((NUM_LAYERS, 1, D_MODEL), jnp.float32),
        w1=jnp.stack([nrm(keys[4 * l + 2], (D_MODEL, DIM_FF))
                      for l in range(NUM_LAYERS)]),
        b1=jnp.zeros((NUM_LAYERS, 1, DIM_FF), jnp.float32),
        w2=jnp.stack([nrm(keys[4 * l + 3], (DIM_FF, D_MODEL))
                      for l in range(NUM_LAYERS)]),
        b2=jnp.zeros((NUM_LAYERS, 1, D_MODEL), jnp.float32),
        ln2w=jnp.ones((NUM_LAYERS, 1, D_MODEL), jnp.float32),
        ln2b=jnp.zeros((NUM_LAYERS, 1, D_MODEL), jnp.float32),
    )
    hw = nrm(keys[-1], (D_MODEL, NUM_CLASSES))
    # Zero-pad the classifier head to 128 output lanes (lane-dense store).
    p["hw"] = jnp.zeros((D_MODEL, HEAD_PAD), jnp.float32).at[:, :NUM_CLASSES].set(hw)
    p["hb"] = jnp.zeros((1, HEAD_PAD), jnp.float32)
    return p


# ------------------------------ pure-JAX ref -------------------------------- #

def _ref_layer_norm(y, w, b):
    mu = jnp.mean(y, axis=-1, keepdims=True)
    var = jnp.mean(jnp.square(y - mu), axis=-1, keepdims=True)
    return (y - mu) * jax.lax.rsqrt(var + EPS) * w + b


def ref_forward(x, p):
    B, S, D = x.shape
    hd = D // NHEAD
    for l in range(NUM_LAYERS):
        qkv = x @ p["wqkv"][l] + p["bqkv"][l, 0]
        q, k, v = qkv[..., :D], qkv[..., D:2 * D], qkv[..., 2 * D:]
        q = q.reshape(B, S, NHEAD, hd).transpose(0, 2, 1, 3) / math.sqrt(hd)
        k = k.reshape(B, S, NHEAD, hd).transpose(0, 2, 1, 3)
        v = v.reshape(B, S, NHEAD, hd).transpose(0, 2, 1, 3)
        s = jnp.einsum("bhqd,bhkd->bhqk", q, k)
        pm = jax.nn.softmax(s, axis=-1)
        a = jnp.einsum("bhqk,bhkd->bhqd", pm, v)
        a = a.transpose(0, 2, 1, 3).reshape(B, S, D)
        a = a @ p["wo"][l] + p["bo"][l, 0]
        x = _ref_layer_norm(x + a, p["ln1w"][l, 0], p["ln1b"][l, 0])
        ff = (jnp.maximum(x @ p["w1"][l] + p["b1"][l, 0], 0.0)
              @ p["w2"][l] + p["b2"][l, 0])
        x = _ref_layer_norm(x + ff, p["ln2w"][l, 0], p["ln2b"][l, 0])
    logits = x[:, -1] @ p["hw"] + p["hb"][0]
    return logits[:, :NUM_CLASSES]


# ---------------------------------- main ------------------------------------ #

if __name__ == "__main__":
    key = jax.random.PRNGKey(0)
    key, kx, kp = jax.random.split(key, 3)
    x = jax.random.normal(kx, (BATCH, SEQ, D_MODEL), jnp.float32)
    params = init_params(kp)

    out = transformer_classifier(x, params)
    out = jax.block_until_ready(out)

    ref = ref_forward(x, params)
    np.testing.assert_allclose(np.asarray(out), np.asarray(ref), rtol=1e-3, atol=1e-3)

    assert out.shape == (BATCH, NUM_CLASSES)
    print("KERNEL_OK")
</pallas_src>

<mosaic_0001>
module attributes {stable_mosaic.version = 11 : i64} {
  func.func @_fused_transformer_kernel(%arg0: i32, %arg1: memref<2x8x32xf32, #tpu.memory_space<vmem>>, %arg2: memref<2x32x96xf32, #tpu.memory_space<vmem>>, %arg3: memref<2x1x96xf32, #tpu.memory_space<vmem>>, %arg4: memref<2x32x32xf32, #tpu.memory_space<vmem>>, %arg5: memref<2x1x32xf32, #tpu.memory_space<vmem>>, %arg6: memref<2x1x32xf32, #tpu.memory_space<vmem>>, %arg7: memref<2x1x32xf32, #tpu.memory_space<vmem>>, %arg8: memref<2x32x64xf32, #tpu.memory_space<vmem>>, %arg9: memref<2x1x64xf32, #tpu.memory_space<vmem>>, %arg10: memref<2x64x32xf32, #tpu.memory_space<vmem>>, %arg11: memref<2x1x32xf32, #tpu.memory_space<vmem>>, %arg12: memref<2x1x32xf32, #tpu.memory_space<vmem>>, %arg13: memref<2x1x32xf32, #tpu.memory_space<vmem>>, %arg14: memref<32x128xf32, #tpu.memory_space<vmem>>, %arg15: memref<1x128xf32, #tpu.memory_space<vmem>>, %arg16: memref<16x128xf32, #tpu.memory_space<vmem>>) attributes {dimension_semantics = [#tpu.dimension_semantics<arbitrary>], iteration_bounds = array<i64: 1>, scalar_prefetch = 0 : i64, scratch_operands = 0 : i64, tpu.core_type = #tpu.core_type<tc>, window_params = [{pipeline_mode = #tpu.pipeline_mode<synchronous>, transform_indices = @transform_0, window_bounds = array<i64: 2, 8, 32>}, {pipeline_mode = #tpu.pipeline_mode<synchronous>, transform_indices = @transform_1, window_bounds = array<i64: 2, 32, 96>}, {pipeline_mode = #tpu.pipeline_mode<synchronous>, transform_indices = @transform_2, window_bounds = array<i64: 2, 1, 96>}, {pipeline_mode = #tpu.pipeline_mode<synchronous>, transform_indices = @transform_3, window_bounds = array<i64: 2, 32, 32>}, {pipeline_mode = #tpu.pipeline_mode<synchronous>, transform_indices = @transform_4, window_bounds = array<i64: 2, 1, 32>}, {pipeline_mode = #tpu.pipeline_mode<synchronous>, transform_indices = @transform_5, window_bounds = array<i64: 2, 1, 32>}, {pipeline_mode = #tpu.pipeline_mode<synchronous>, transform_indices = @transform_6, window_bounds = array<i64: 2, 1, 32>}, {pipeline_mode = #tpu.pipeline_mode<synchronous>, transform_indices = @transform_7, window_bounds = array<i64: 2, 32, 64>}, {pipeline_mode = #tpu.pipeline_mode<synchronous>, transform_indices = @transform_8, window_bounds = array<i64: 2, 1, 64>}, {pipeline_mode = #tpu.pipeline_mode<synchronous>, transform_indices = @transform_9, window_bounds = array<i64: 2, 64, 32>}, {pipeline_mode = #tpu.pipeline_mode<synchronous>, transform_indices = @transform_10, window_bounds = array<i64: 2, 1, 32>}, {pipeline_mode = #tpu.pipeline_mode<synchronous>, transform_indices = @transform_11, window_bounds = array<i64: 2, 1, 32>}, {pipeline_mode = #tpu.pipeline_mode<synchronous>, transform_indices = @transform_12, window_bounds = array<i64: 2, 1, 32>}, {pipeline_mode = #tpu.pipeline_mode<synchronous>, transform_indices = @transform_13, window_bounds = array<i64: 32, 128>}, {pipeline_mode = #tpu.pipeline_mode<synchronous>, transform_indices = @transform_14, window_bounds = array<i64: 1, 128>}, {pipeline_mode = #tpu.pipeline_mode<synchronous>, transform_indices = @transform_15, window_bounds = array<i64: 16, 128>}]} {
    %c0 = arith.constant 0 : index
    %c0_0 = arith.constant 0 : index
    %c0_1 = arith.constant 0 : index
    %0 = vector.load %arg1[%c0, %c0_0, %c0_1] : memref<2x8x32xf32, #tpu.memory_space<vmem>>, vector<2x8x32xf32>
    %1 = vector.shape_cast %0 : vector<2x8x32xf32> to vector<16x32xf32>
    %c0_2 = arith.constant 0 : index
    %c0_3 = arith.constant 0 : index
    %c0_4 = arith.constant 0 : index
    %2 = vector.load %arg2[%c0_2, %c0_3, %c0_4] : memref<2x32x96xf32, #tpu.memory_space<vmem>>, vector<1x32x96xf32>
    %3 = vector.shape_cast %2 : vector<1x32x96xf32> to vector<32x96xf32>
    %c0_5 = arith.constant 0 : index
    %c0_6 = arith.constant 0 : index
    %c0_7 = arith.constant 0 : index
    %4 = vector.load %arg3[%c0_5, %c0_6, %c0_7] : memref<2x1x96xf32, #tpu.memory_space<vmem>>, vector<1x1x96xf32>
    %5 = vector.shape_cast %4 : vector<1x1x96xf32> to vector<1x96xf32>
    %c0_8 = arith.constant 0 : index
    %c0_9 = arith.constant 0 : index
    %c0_10 = arith.constant 0 : index
    %6 = vector.load %arg4[%c0_8, %c0_9, %c0_10] : memref<2x32x32xf32, #tpu.memory_space<vmem>>, vector<1x32x32xf32>
    %7 = vector.shape_cast %6 : vector<1x32x32xf32> to vector<32x32xf32>
    %c0_11 = arith.constant 0 : index
    %c0_12 = arith.constant 0 : index
    %c0_13 = arith.constant 0 : index
    %8 = vector.load %arg5[%c0_11, %c0_12, %c0_13] : memref<2x1x32xf32, #tpu.memory_space<vmem>>, vector<1x1x32xf32>
    %9 = vector.shape_cast %8 : vector<1x1x32xf32> to vector<1x32xf32>
    %c0_14 = arith.constant 0 : index
    %c0_15 = arith.constant 0 : index
    %c0_16 = arith.constant 0 : index
    %10 = vector.load %arg6[%c0_14, %c0_15, %c0_16] : memref<2x1x32xf32, #tpu.memory_space<vmem>>, vector<1x1x32xf32>
    %11 = vector.shape_cast %10 : vector<1x1x32xf32> to vector<1x32xf32>
    %c0_17 = arith.constant 0 : index
    %c0_18 = arith.constant 0 : index
    %c0_19 = arith.constant 0 : index
    %12 = vector.load %arg7[%c0_17, %c0_18, %c0_19] : memref<2x1x32xf32, #tpu.memory_space<vmem>>, vector<1x1x32xf32>
    %13 = vector.shape_cast %12 : vector<1x1x32xf32> to vector<1x32xf32>
    %c0_20 = arith.constant 0 : index
    %c0_21 = arith.constant 0 : index
    %c0_22 = arith.constant 0 : index
    %14 = vector.load %arg8[%c0_20, %c0_21, %c0_22] : memref<2x32x64xf32, #tpu.memory_space<vmem>>, vector<1x32x64xf32>
    %15 = vector.shape_cast %14 : vector<1x32x64xf32> to vector<32x64xf32>
    %c0_23 = arith.constant 0 : index
    %c0_24 = arith.constant 0 : index
    %c0_25 = arith.constant 0 : index
    %16 = vector.load %arg9[%c0_23, %c0_24, %c0_25] : memref<2x1x64xf32, #tpu.memory_space<vmem>>, vector<1x1x64xf32>
    %17 = vector.shape_cast %16 : vector<1x1x64xf32> to vector<1x64xf32>
    %c0_26 = arith.constant 0 : index
    %c0_27 = arith.constant 0 : index
    %c0_28 = arith.constant 0 : index
    %18 = vector.load %arg10[%c0_26, %c0_27, %c0_28] : memref<2x64x32xf32, #tpu.memory_space<vmem>>, vector<1x64x32xf32>
    %19 = vector.shape_cast %18 : vector<1x64x32xf32> to vector<64x32xf32>
    %c0_29 = arith.constant 0 : index
    %c0_30 = arith.constant 0 : index
    %c0_31 = arith.constant 0 : index
    %20 = vector.load %arg11[%c0_29, %c0_30, %c0_31] : memref<2x1x32xf32, #tpu.memory_space<vmem>>, vector<1x1x32xf32>
    %21 = vector.shape_cast %20 : vector<1x1x32xf32> to vector<1x32xf32>
    %c0_32 = arith.constant 0 : index
    %c0_33 = arith.constant 0 : index
    %c0_34 = arith.constant 0 : index
    %22 = vector.load %arg12[%c0_32, %c0_33, %c0_34] : memref<2x1x32xf32, #tpu.memory_space<vmem>>, vector<1x1x32xf32>
    %23 = vector.shape_cast %22 : vector<1x1x32xf32> to vector<1x32xf32>
    %c0_35 = arith.constant 0 : index
    %c0_36 = arith.constant 0 : index
    %c0_37 = arith.constant 0 : index
    %24 = vector.load %arg13[%c0_35, %c0_36, %c0_37] : memref<2x1x32xf32, #tpu.memory_space<vmem>>, vector<1x1x32xf32>
    %25 = vector.shape_cast %24 : vector<1x1x32xf32> to vector<1x32xf32>
    %cst = arith.constant dense<0.000000e+00> : vector<16x96xf32>
    %26 = tpu.matmul %1, %3, %cst {dimension_numbers = #tpu.dot_dimension_numbers<[1], [0], [0], [1], [0, 0, 1, 1], [], []>} : vector<16x32xf32>, vector<32x96xf32>, vector<16x96xf32> -> vector<16x96xf32>
    %27 = vector.broadcast %5 : vector<1x96xf32> to vector<16x96xf32>
    %28 = arith.addf %26, %27 : vector<16x96xf32>
    %29 = vector.extract_strided_slice %28 {offsets = [0, 0], sizes = [16, 8], strides = [1, 1]} : vector<16x96xf32> to vector<16x8xf32>
    %30 = vector.shape_cast %29 : vector<16x8xf32> to vector<2x8x8xf32>
    %31 = vector.extract_strided_slice %28 {offsets = [0, 8], sizes = [16, 8], strides = [1, 1]} : vector<16x96xf32> to vector<16x8xf32>
    %32 = vector.shape_cast %31 : vector<16x8xf32> to vector<2x8x8xf32>
    %33 = vector.extract_strided_slice %28 {offsets = [0, 16], sizes = [16, 8], strides = [1, 1]} : vector<16x96xf32> to vector<16x8xf32>
    %34 = vector.shape_cast %33 : vector<16x8xf32> to vector<2x8x8xf32>
    %35 = vector.extract_strided_slice %28 {offsets = [0, 24], sizes = [16, 8], strides = [1, 1]} : vector<16x96xf32> to vector<16x8xf32>
    %36 = vector.shape_cast %35 : vector<16x8xf32> to vector<2x8x8xf32>
    %37 = tpu.concatenate %30, %32, %34, %36 in 0 : vector<2x8x8xf32>, vector<2x8x8xf32>, vector<2x8x8xf32>, vector<2x8x8xf32> -> vector<8x8x8xf32>
    %cst_38 = arith.constant 0.353553385 : f32
    %38 = vector.broadcast %cst_38 : f32 to vector<8x8x8xf32>
    %39 = arith.mulf %37, %38 : vector<8x8x8xf32>
    %40 = vector.extract_strided_slice %28 {offsets = [0, 32], sizes = [16, 8], strides = [1, 1]} : vector<16x96xf32> to vector<16x8xf32>
    %41 = vector.shape_cast %40 : vector<16x8xf32> to vector<2x8x8xf32>
    %42 = vector.extract_strided_slice %28 {offsets = [0, 40], sizes = [16, 8], strides = [1, 1]} : vector<16x96xf32> to vector<16x8xf32>
    %43 = vector.shape_cast %42 : vector<16x8xf32> to vector<2x8x8xf32>
    %44 = vector.extract_strided_slice %28 {offsets = [0, 48], sizes = [16, 8], strides = [1, 1]} : vector<16x96xf32> to vector<16x8xf32>
    %45 = vector.shape_cast %44 : vector<16x8xf32> to vector<2x8x8xf32>
    %46 = vector.extract_strided_slice %28 {offsets = [0, 56], sizes = [16, 8], strides = [1, 1]} : vector<16x96xf32> to vector<16x8xf32>
    %47 = vector.shape_cast %46 : vector<16x8xf32> to vector<2x8x8xf32>
    %48 = tpu.concatenate %41, %43, %45, %47 in 0 : vector<2x8x8xf32>, vector<2x8x8xf32>, vector<2x8x8xf32>, vector<2x8x8xf32> -> vector<8x8x8xf32>
    %49 = vector.extract_strided_slice %28 {offsets = [0, 64], sizes = [16, 8], strides = [1, 1]} : vector<16x96xf32> to vector<16x8xf32>
    %50 = vector.shape_cast %49 : vector<16x8xf32> to vector<2x8x8xf32>
    %51 = vector.extract_strided_slice %28 {offsets = [0, 72], sizes = [16, 8], strides = [1, 1]} : vector<16x96xf32> to vector<16x8xf32>
    %52 = vector.shape_cast %51 : vector<16x8xf32> to vector<2x8x8xf32>
    %53 = vector.extract_strided_slice %28 {offsets = [0, 80], sizes = [16, 8], strides = [1, 1]} : vector<16x96xf32> to vector<16x8xf32>
    %54 = vector.shape_cast %53 : vector<16x8xf32> to vector<2x8x8xf32>
    %55 = vector.extract_strided_slice %28 {offsets = [0, 88], sizes = [16, 8], strides = [1, 1]} : vector<16x96xf32> to vector<16x8xf32>
    %56 = vector.shape_cast %55 : vector<16x8xf32> to vector<2x8x8xf32>
    %57 = tpu.concatenate %50, %52, %54, %56 in 0 : vector<2x8x8xf32>, vector<2x8x8xf32>, vector<2x8x8xf32>, vector<2x8x8xf32> -> vector<8x8x8xf32>
    "tpu.trace_start"() <{level = 10 : i32, message = "bqd,bkd->bqk"}> : () -> ()
    %cst_39 = arith.constant dense<0.000000e+00> : vector<8x8x8xf32>
    %58 = tpu.matmul %39, %48, %cst_39 {dimension_numbers = #tpu.dot_dimension_numbers<[2], [2], [1], [1], [0, 0, 0, 1, 1, 1], [0], [0]>} : vector<8x8x8xf32>, vector<8x8x8xf32>, vector<8x8x8xf32> -> vector<8x8x8xf32>
    "tpu.trace_stop"() : () -> ()
    %cst_40 = arith.constant dense<0xFF800000> : vector<8x8xf32>
    %59 = vector.multi_reduction <maximumf>, %58, %cst_40 [2] : vector<8x8x8xf32> to vector<8x8xf32>
    %60 = vector.shape_cast %59 : vector<8x8xf32> to vector<8x8x1xf32>
    %61 = vector.broadcast %60 : vector<8x8x1xf32> to vector<8x8x8xf32>
    %62 = arith.subf %58, %61 : vector<8x8x8xf32>
    %63 = math.exp %62 : vector<8x8x8xf32>
    %cst_41 = arith.constant dense<0.000000e+00> : vector<8x8xf32>
    %64 = vector.multi_reduction <add>, %63, %cst_41 [2] : vector<8x8x8xf32> to vector<8x8xf32>
    %65 = vector.shape_cast %64 : vector<8x8xf32> to vector<8x8x1xf32>
    %66 = vector.broadcast %65 : vector<8x8x1xf32> to vector<8x8x8xf32>
    %67 = arith.divf %63, %66 : vector<8x8x8xf32>
    "tpu.trace_start"() <{level = 10 : i32, message = "bqk,bkd->bqd"}> : () -> ()
    %cst_42 = arith.constant dense<0.000000e+00> : vector<8x8x8xf32>
    %68 = tpu.matmul %67, %57, %cst_42 {dimension_numbers = #tpu.dot_dimension_numbers<[2], [1], [1], [2], [0, 0, 0, 1, 1, 2], [0], [0]>} : vector<8x8x8xf32>, vector<8x8x8xf32>, vector<8x8x8xf32> -> vector<8x8x8xf32>
    "tpu.trace_stop"() : () -> ()
    %69 = vector.extract_strided_slice %68 {offsets = [0, 0, 0], sizes = [2, 8, 8], strides = [1, 1, 1]} : vector<8x8x8xf32> to vector<2x8x8xf32>
    %70 = vector.shape_cast %69 : vector<2x8x8xf32> to vector<16x8xf32>
    %71 = vector.extract_strided_slice %68 {offsets = [2, 0, 0], sizes = [2, 8, 8], strides = [1, 1, 1]} : vector<8x8x8xf32> to vector<2x8x8xf32>
    %72 = vector.shape_cast %71 : vector<2x8x8xf32> to vector<16x8xf32>
    %73 = vector.extract_strided_slice %68 {offsets = [4, 0, 0], sizes = [2, 8, 8], strides = [1, 1, 1]} : vector<8x8x8xf32> to vector<2x8x8xf32>
    %74 = vector.shape_cast %73 : vector<2x8x8xf32> to vector<16x8xf32>
    %75 = vector.extract_strided_slice %68 {offsets = [6, 0, 0], sizes = [2, 8, 8], strides = [1, 1, 1]} : vector<8x8x8xf32> to vector<2x8x8xf32>
    %76 = vector.shape_cast %75 : vector<2x8x8xf32> to vector<16x8xf32>
    %77 = tpu.concatenate %70, %72, %74, %76 in 1 : vector<16x8xf32>, vector<16x8xf32>, vector<16x8xf32>, vector<16x8xf32> -> vector<16x32xf32>
    %cst_43 = arith.constant dense<0.000000e+00> : vector<16x32xf32>
    %78 = tpu.matmul %77, %7, %cst_43 {dimension_numbers = #tpu.dot_dimension_numbers<[1], [0], [0], [1], [0, 0, 1, 1], [], []>} : vector<16x32xf32>, vector<32x32xf32>, vector<16x32xf32> -> vector<16x32xf32>
    %79 = vector.broadcast %9 : vector<1x32xf32> to vector<16x32xf32>
    %80 = arith.addf %78, %79 : vector<16x32xf32>
    %81 = arith.addf %1, %80 : vector<16x32xf32>
    %cst_44 = arith.constant dense<0.000000e+00> : vector<16xf32>
    %82 = vector.multi_reduction <add>, %81, %cst_44 [1] : vector<16x32xf32> to vector<16xf32>
    %83 = vector.shape_cast %82 : vector<16xf32> to vector<16x1xf32>
    %cst_45 = arith.constant 3.200000e+01 : f32
    %84 = vector.broadcast %cst_45 : f32 to vector<16x1xf32>
    %85 = arith.divf %83, %84 : vector<16x1xf32>
    %86 = vector.broadcast %85 : vector<16x1xf32> to vector<16x32xf32>
    %87 = arith.subf %81, %86 : vector<16x32xf32>
    %88 = arith.mulf %87, %87 : vector<16x32xf32>
    %cst_46 = arith.constant dense<0.000000e+00> : vector<16xf32>
    %89 = vector.multi_reduction <add>, %88, %cst_46 [1] : vector<16x32xf32> to vector<16xf32>
    %90 = vector.shape_cast %89 : vector<16xf32> to vector<16x1xf32>
    %cst_47 = arith.constant 3.200000e+01 : f32
    %91 = vector.broadcast %cst_47 : f32 to vector<16x1xf32>
    %92 = arith.divf %90, %91 : vector<16x1xf32>
    %93 = vector.broadcast %85 : vector<16x1xf32> to vector<16x32xf32>
    %94 = arith.subf %81, %93 : vector<16x32xf32>
    %cst_48 = arith.constant 9.99999974E-6 : f32
    %95 = vector.broadcast %cst_48 : f32 to vector<16x1xf32>
    %96 = arith.addf %92, %95 : vector<16x1xf32>
    %97 = math.rsqrt %96 : vector<16x1xf32>
    %98 = vector.broadcast %97 : vector<16x1xf32> to vector<16x32xf32>
    %99 = arith.mulf %94, %98 : vector<16x32xf32>
    %100 = vector.broadcast %11 : vector<1x32xf32> to vector<16x32xf32>
    %101 = arith.mulf %99, %100 : vector<16x32xf32>
    %102 = vector.broadcast %13 : vector<1x32xf32> to vector<16x32xf32>
    %103 = arith.addf %101, %102 : vector<16x32xf32>
    %cst_49 = arith.constant dense<0.000000e+00> : vector<16x64xf32>
    %104 = tpu.matmul %103, %15, %cst_49 {dimension_numbers = #tpu.dot_dimension_numbers<[1], [0], [0], [1], [0, 0, 1, 1], [], []>} : vector<16x32xf32>, vector<32x64xf32>, vector<16x64xf32> -> vector<16x64xf32>
    %105 = vector.broadcast %17 : vector<1x64xf32> to vector<16x64xf32>
    %106 = arith.addf %104, %105 : vector<16x64xf32>
    %cst_50 = arith.constant 0.000000e+00 : f32
    %107 = vector.broadcast %cst_50 : f32 to vector<16x64xf32>
    %108 = arith.maximumf %106, %107 : vector<16x64xf32>
    %cst_51 = arith.constant dense<0.000000e+00> : vector<16x32xf32>
    %109 = tpu.matmul %108, %19, %cst_51 {dimension_numbers = #tpu.dot_dimension_numbers<[1], [0], [0], [1], [0, 0, 1, 1], [], []>} : vector<16x64xf32>, vector<64x32xf32>, vector<16x32xf32> -> vector<16x32xf32>
    %110 = vector.broadcast %21 : vector<1x32xf32> to vector<16x32xf32>
    %111 = arith.addf %109, %110 : vector<16x32xf32>
    %112 = arith.addf %103, %111 : vector<16x32xf32>
    %cst_52 = arith.constant dense<0.000000e+00> : vector<16xf32>
    %113 = vector.multi_reduction <add>, %112, %cst_52 [1] : vector<16x32xf32> to vector<16xf32>
    %114 = vector.shape_cast %113 : vector<16xf32> to vector<16x1xf32>
    %cst_53 = arith.constant 3.200000e+01 : f32
    %115 = vector.broadcast %cst_53 : f32 to vector<16x1xf32>
    %116 = arith.divf %114, %115 : vector<16x1xf32>
    %117 = vector.broadcast %116 : vector<16x1xf32> to vector<16x32xf32>
    %118 = arith.subf %112, %117 : vector<16x32xf32>
    %119 = arith.mulf %118, %118 : vector<16x32xf32>
    %cst_54 = arith.constant dense<0.000000e+00> : vector<16xf32>
    %120 = vector.multi_reduction <add>, %119, %cst_54 [1] : vector<16x32xf32> to vector<16xf32>
    %121 = vector.shape_cast %120 : vector<16xf32> to vector<16x1xf32>
    %cst_55 = arith.constant 3.200000e+01 : f32
    %122 = vector.broadcast %cst_55 : f32 to vector<16x1xf32>
    %123 = arith.divf %121, %122 : vector<16x1xf32>
    %124 = vector.broadcast %116 : vector<16x1xf32> to vector<16x32xf32>
    %125 = arith.subf %112, %124 : vector<16x32xf32>
    %cst_56 = arith.constant 9.99999974E-6 : f32
    %126 = vector.broadcast %cst_56 : f32 to vector<16x1xf32>
    %127 = arith.addf %123, %126 : vector<16x1xf32>
    %128 = math.rsqrt %127 : vector<16x1xf32>
    %129 = vector.broadcast %128 : vector<16x1xf32> to vector<16x32xf32>
    %130 = arith.mulf %125, %129 : vector<16x32xf32>
    %131 = vector.broadcast %23 : vector<1x32xf32> to vector<16x32xf32>
    %132 = arith.mulf %130, %131 : vector<16x32xf32>
    %133 = vector.broadcast %25 : vector<1x32xf32> to vector<16x32xf32>
    %134 = arith.addf %132, %133 : vector<16x32xf32>
    %c1 = arith.constant 1 : index
    %c0_57 = arith.constant 0 : index
    %c0_58 = arith.constant 0 : index
    %135 = vector.load %arg2[%c1, %c0_57, %c0_58] : memref<2x32x96xf32, #tpu.memory_space<vmem>>, vector<1x32x96xf32>
    %136 = vector.shape_cast %135 : vector<1x32x96xf32> to vector<32x96xf32>
    %c1_59 = arith.constant 1 : index
    %c0_60 = arith.constant 0 : index
    %c0_61 = arith.constant 0 : index
    %137 = vector.load %arg3[%c1_59, %c0_60, %c0_61] : memref<2x1x96xf32, #tpu.memory_space<vmem>>, vector<1x1x96xf32>
    %138 = vector.shape_cast %137 : vector<1x1x96xf32> to vector<1x96xf32>
    %c1_62 = arith.constant 1 : index
    %c0_63 = arith.constant 0 : index
    %c0_64 = arith.constant 0 : index
    %139 = vector.load %arg4[%c1_62, %c0_63, %c0_64] : memref<2x32x32xf32, #tpu.memory_space<vmem>>, vector<1x32x32xf32>
    %140 = vector.shape_cast %139 : vector<1x32x32xf32> to vector<32x32xf32>
    %c1_65 = arith.constant 1 : index
    %c0_66 = arith.constant 0 : index
    %c0_67 = arith.constant 0 : index
    %141 = vector.load %arg5[%c1_65, %c0_66, %c0_67] : memref<2x1x32xf32, #tpu.memory_space<vmem>>, vector<1x1x32xf32>
    %142 = vector.shape_cast %141 : vector<1x1x32xf32> to vector<1x32xf32>
    %c1_68 = arith.constant 1 : index
    %c0_69 = arith.constant 0 : index
    %c0_70 = arith.constant 0 : index
    %143 = vector.load %arg6[%c1_68, %c0_69, %c0_70] : memref<2x1x32xf32, #tpu.memory_space<vmem>>, vector<1x1x32xf32>
    %144 = vector.shape_cast %143 : vector<1x1x32xf32> to vector<1x32xf32>
    %c1_71 = arith.constant 1 : index
    %c0_72 = arith.constant 0 : index
    %c0_73 = arith.constant 0 : index
    %145 = vector.load %arg7[%c1_71, %c0_72, %c0_73] : memref<2x1x32xf32, #tpu.memory_space<vmem>>, vector<1x1x32xf32>
    %146 = vector.shape_cast %145 : vector<1x1x32xf32> to vector<1x32xf32>
    %c1_74 = arith.constant 1 : index
    %c0_75 = arith.constant 0 : index
    %c0_76 = arith.constant 0 : index
    %147 = vector.load %arg8[%c1_74, %c0_75, %c0_76] : memref<2x32x64xf32, #tpu.memory_space<vmem>>, vector<1x32x64xf32>
    %148 = vector.shape_cast %147 : vector<1x32x64xf32> to vector<32x64xf32>
    %c1_77 = arith.constant 1 : index
    %c0_78 = arith.constant 0 : index
    %c0_79 = arith.constant 0 : index
    %149 = vector.load %arg9[%c1_77, %c0_78, %c0_79] : memref<2x1x64xf32, #tpu.memory_space<vmem>>, vector<1x1x64xf32>
    %150 = vector.shape_cast %149 : vector<1x1x64xf32> to vector<1x64xf32>
    %c1_80 = arith.constant 1 : index
    %c0_81 = arith.constant 0 : index
    %c0_82 = arith.constant 0 : index
    %151 = vector.load %arg10[%c1_80, %c0_81, %c0_82] : memref<2x64x32xf32, #tpu.memory_space<vmem>>, vector<1x64x32xf32>
    %152 = vector.shape_cast %151 : vector<1x64x32xf32> to vector<64x32xf32>
    %c1_83 = arith.constant 1 : index
    %c0_84 = arith.constant 0 : index
    %c0_85 = arith.constant 0 : index
    %153 = vector.load %arg11[%c1_83, %c0_84, %c0_85] : memref<2x1x32xf32, #tpu.memory_space<vmem>>, vector<1x1x32xf32>
    %154 = vector.shape_cast %153 : vector<1x1x32xf32> to vector<1x32xf32>
    %c1_86 = arith.constant 1 : index
    %c0_87 = arith.constant 0 : index
    %c0_88 = arith.constant 0 : index
    %155 = vector.load %arg12[%c1_86, %c0_87, %c0_88] : memref<2x1x32xf32, #tpu.memory_space<vmem>>, vector<1x1x32xf32>
    %156 = vector.shape_cast %155 : vector<1x1x32xf32> to vector<1x32xf32>
    %c1_89 = arith.constant 1 : index
    %c0_90 = arith.constant 0 : index
    %c0_91 = arith.constant 0 : index
    %157 = vector.load %arg13[%c1_89, %c0_90, %c0_91] : memref<2x1x32xf32, #tpu.memory_space<vmem>>, vector<1x1x32xf32>
    %158 = vector.shape_cast %157 : vector<1x1x32xf32> to vector<1x32xf32>
    %cst_92 = arith.constant dense<0.000000e+00> : vector<16x96xf32>
    %159 = tpu.matmul %134, %136, %cst_92 {dimension_numbers = #tpu.dot_dimension_numbers<[1], [0], [0], [1], [0, 0, 1, 1], [], []>} : vector<16x32xf32>, vector<32x96xf32>, vector<16x96xf32> -> vector<16x96xf32>
    %160 = vector.broadcast %138 : vector<1x96xf32> to vector<16x96xf32>
    %161 = arith.addf %159, %160 : vector<16x96xf32>
    %162 = vector.extract_strided_slice %161 {offsets = [0, 0], sizes = [16, 8], strides = [1, 1]} : vector<16x96xf32> to vector<16x8xf32>
    %163 = vector.shape_cast %162 : vector<16x8xf32> to vector<2x8x8xf32>
    %164 = vector.extract_strided_slice %161 {offsets = [0, 8], sizes = [16, 8], strides = [1, 1]} : vector<16x96xf32> to vector<16x8xf32>
    %165 = vector.shape_cast %164 : vector<16x8xf32> to vector<2x8x8xf32>
    %166 = vector.extract_strided_slice %161 {offsets = [0, 16], sizes = [16, 8], strides = [1, 1]} : vector<16x96xf32> to vector<16x8xf32>
    %167 = vector.shape_cast %166 : vector<16x8xf32> to vector<2x8x8xf32>
    %168 = vector.extract_strided_slice %161 {offsets = [0, 24], sizes = [16, 8], strides = [1, 1]} : vector<16x96xf32> to vector<16x8xf32>
    %169 = vector.shape_cast %168 : vector<16x8xf32> to vector<2x8x8xf32>
    %170 = tpu.concatenate %163, %165, %167, %169 in 0 : vector<2x8x8xf32>, vector<2x8x8xf32>, vector<2x8x8xf32>, vector<2x8x8xf32> -> vector<8x8x8xf32>
    %cst_93 = arith.constant 0.353553385 : f32
    %171 = vector.broadcast %cst_93 : f32 to vector<8x8x8xf32>
    %172 = arith.mulf %170, %171 : vector<8x8x8xf32>
    %173 = vector.extract_strided_slice %161 {offsets = [0, 32], sizes = [16, 8], strides = [1, 1]} : vector<16x96xf32> to vector<16x8xf32>
    %174 = vector.shape_cast %173 : vector<16x8xf32> to vector<2x8x8xf32>
    %175 = vector.extract_strided_slice %161 {offsets = [0, 40], sizes = [16, 8], strides = [1, 1]} : vector<16x96xf32> to vector<16x8xf32>
    %176 = vector.shape_cast %175 : vector<16x8xf32> to vector<2x8x8xf32>
    %177 = vector.extract_strided_slice %161 {offsets = [0, 48], sizes = [16, 8], strides = [1, 1]} : vector<16x96xf32> to vector<16x8xf32>
    %178 = vector.shape_cast %177 : vector<16x8xf32> to vector<2x8x8xf32>
    %179 = vector.extract_strided_slice %161 {offsets = [0, 56], sizes = [16, 8], strides = [1, 1]} : vector<16x96xf32> to vector<16x8xf32>
    %180 = vector.shape_cast %179 : vector<16x8xf32> to vector<2x8x8xf32>
    %181 = tpu.concatenate %174, %176, %178, %180 in 0 : vector<2x8x8xf32>, vector<2x8x8xf32>, vector<2x8x8xf32>, vector<2x8x8xf32> -> vector<8x8x8xf32>
    %182 = vector.extract_strided_slice %161 {offsets = [0, 64], sizes = [16, 8], strides = [1, 1]} : vector<16x96xf32> to vector<16x8xf32>
    %183 = vector.shape_cast %182 : vector<16x8xf32> to vector<2x8x8xf32>
    %184 = vector.extract_strided_slice %161 {offsets = [0, 72], sizes = [16, 8], strides = [1, 1]} : vector<16x96xf32> to vector<16x8xf32>
    %185 = vector.shape_cast %184 : vector<16x8xf32> to vector<2x8x8xf32>
    %186 = vector.extract_strided_slice %161 {offsets = [0, 80], sizes = [16, 8], strides = [1, 1]} : vector<16x96xf32> to vector<16x8xf32>
    %187 = vector.shape_cast %186 : vector<16x8xf32> to vector<2x8x8xf32>
    %188 = vector.extract_strided_slice %161 {offsets = [0, 88], sizes = [16, 8], strides = [1, 1]} : vector<16x96xf32> to vector<16x8xf32>
    %189 = vector.shape_cast %188 : vector<16x8xf32> to vector<2x8x8xf32>
    %190 = tpu.concatenate %183, %185, %187, %189 in 0 : vector<2x8x8xf32>, vector<2x8x8xf32>, vector<2x8x8xf32>, vector<2x8x8xf32> -> vector<8x8x8xf32>
    "tpu.trace_start"() <{level = 10 : i32, message = "bqd,bkd->bqk"}> : () -> ()
    %cst_94 = arith.constant dense<0.000000e+00> : vector<8x8x8xf32>
    %191 = tpu.matmul %172, %181, %cst_94 {dimension_numbers = #tpu.dot_dimension_numbers<[2], [2], [1], [1], [0, 0, 0, 1, 1, 1], [0], [0]>} : vector<8x8x8xf32>, vector<8x8x8xf32>, vector<8x8x8xf32> -> vector<8x8x8xf32>
    "tpu.trace_stop"() : () -> ()
    %cst_95 = arith.constant dense<0xFF800000> : vector<8x8xf32>
    %192 = vector.multi_reduction <maximumf>, %191, %cst_95 [2] : vector<8x8x8xf32> to vector<8x8xf32>
    %193 = vector.shape_cast %192 : vector<8x8xf32> to vector<8x8x1xf32>
    %194 = vector.broadcast %193 : vector<8x8x1xf32> to vector<8x8x8xf32>
    %195 = arith.subf %191, %194 : vector<8x8x8xf32>
    %196 = math.exp %195 : vector<8x8x8xf32>
    %cst_96 = arith.constant dense<0.000000e+00> : vector<8x8xf32>
    %197 = vector.multi_reduction <add>, %196, %cst_96 [2] : vector<8x8x8xf32> to vector<8x8xf32>
    %198 = vector.shape_cast %197 : vector<8x8xf32> to vector<8x8x1xf32>
    %199 = vector.broadcast %198 : vector<8x8x1xf32> to vector<8x8x8xf32>
    %200 = arith.divf %196, %199 : vector<8x8x8xf32>
    "tpu.trace_start"() <{level = 10 : i32, message = "bqk,bkd->bqd"}> : () -> ()
    %cst_97 = arith.constant dense<0.000000e+00> : vector<8x8x8xf32>
    %201 = tpu.matmul %200, %190, %cst_97 {dimension_numbers = #tpu.dot_dimension_numbers<[2], [1], [1], [2], [0, 0, 0, 1, 1, 2], [0], [0]>} : vector<8x8x8xf32>, vector<8x8x8xf32>, vector<8x8x8xf32> -> vector<8x8x8xf32>
    "tpu.trace_stop"() : () -> ()
    %202 = vector.extract_strided_slice %201 {offsets = [0, 0, 0], sizes = [2, 8, 8], strides = [1, 1, 1]} : vector<8x8x8xf32> to vector<2x8x8xf32>
    %203 = vector.shape_cast %202 : vector<2x8x8xf32> to vector<16x8xf32>
    %204 = vector.extract_strided_slice %201 {offsets = [2, 0, 0], sizes = [2, 8, 8], strides = [1, 1, 1]} : vector<8x8x8xf32> to vector<2x8x8xf32>
    %205 = vector.shape_cast %204 : vector<2x8x8xf32> to vector<16x8xf32>
    %206 = vector.extract_strided_slice %201 {offsets = [4, 0, 0], sizes = [2, 8, 8], strides = [1, 1, 1]} : vector<8x8x8xf32> to vector<2x8x8xf32>
    %207 = vector.shape_cast %206 : vector<2x8x8xf32> to vector<16x8xf32>
    %208 = vector.extract_strided_slice %201 {offsets = [6, 0, 0], sizes = [2, 8, 8], strides = [1, 1, 1]} : vector<8x8x8xf32> to vector<2x8x8xf32>
    %209 = vector.shape_cast %208 : vector<2x8x8xf32> to vector<16x8xf32>
    %210 = tpu.concatenate %203, %205, %207, %209 in 1 : vector<16x8xf32>, vector<16x8xf32>, vector<16x8xf32>, vector<16x8xf32> -> vector<16x32xf32>
    %cst_98 = arith.constant dense<0.000000e+00> : vector<16x32xf32>
    %211 = tpu.matmul %210, %140, %cst_98 {dimension_numbers = #tpu.dot_dimension_numbers<[1], [0], [0], [1], [0, 0, 1, 1], [], []>} : vector<16x32xf32>, vector<32x32xf32>, vector<16x32xf32> -> vector<16x32xf32>
    %212 = vector.broadcast %142 : vector<1x32xf32> to vector<16x32xf32>
    %213 = arith.addf %211, %212 : vector<16x32xf32>
    %214 = arith.addf %134, %213 : vector<16x32xf32>
    %cst_99 = arith.constant dense<0.000000e+00> : vector<16xf32>
    %215 = vector.multi_reduction <add>, %214, %cst_99 [1] : vector<16x32xf32> to vector<16xf32>
    %216 = vector.shape_cast %215 : vector<16xf32> to vector<16x1xf32>
    %cst_100 = arith.constant 3.200000e+01 : f32
    %217 = vector.broadcast %cst_100 : f32 to vector<16x1xf32>
    %218 = arith.divf %216, %217 : vector<16x1xf32>
    %219 = vector.broadcast %218 : vector<16x1xf32> to vector<16x32xf32>
    %220 = arith.subf %214, %219 : vector<16x32xf32>
    %221 = arith.mulf %220, %220 : vector<16x32xf32>
    %cst_101 = arith.constant dense<0.000000e+00> : vector<16xf32>
    %222 = vector.multi_reduction <add>, %221, %cst_101 [1] : vector<16x32xf32> to vector<16xf32>
    %223 = vector.shape_cast %222 : vector<16xf32> to vector<16x1xf32>
    %cst_102 = arith.constant 3.200000e+01 : f32
    %224 = vector.broadcast %cst_102 : f32 to vector<16x1xf32>
    %225 = arith.divf %223, %224 : vector<16x1xf32>
    %226 = vector.broadcast %218 : vector<16x1xf32> to vector<16x32xf32>
    %227 = arith.subf %214, %226 : vector<16x32xf32>
    %cst_103 = arith.constant 9.99999974E-6 : f32
    %228 = vector.broadcast %cst_103 : f32 to vector<16x1xf32>
    %229 = arith.addf %225, %228 : vector<16x1xf32>
    %230 = math.rsqrt %229 : vector<16x1xf32>
    %231 = vector.broadcast %230 : vector<16x1xf32> to vector<16x32xf32>
    %232 = arith.mulf %227, %231 : vector<16x32xf32>
    %233 = vector.broadcast %144 : vector<1x32xf32> to vector<16x32xf32>
    %234 = arith.mulf %232, %233 : vector<16x32xf32>
    %235 = vector.broadcast %146 : vector<1x32xf32> to vector<16x32xf32>
    %236 = arith.addf %234, %235 : vector<16x32xf32>
    %cst_104 = arith.constant dense<0.000000e+00> : vector<16x64xf32>
    %237 = tpu.matmul %236, %148, %cst_104 {dimension_numbers = #tpu.dot_dimension_numbers<[1], [0], [0], [1], [0, 0, 1, 1], [], []>} : vector<16x32xf32>, vector<32x64xf32>, vector<16x64xf32> -> vector<16x64xf32>
    %238 = vector.broadcast %150 : vector<1x64xf32> to vector<16x64xf32>
    %239 = arith.addf %237, %238 : vector<16x64xf32>
    %cst_105 = arith.constant 0.000000e+00 : f32
    %240 = vector.broadcast %cst_105 : f32 to vector<16x64xf32>
    %241 = arith.maximumf %239, %240 : vector<16x64xf32>
    %cst_106 = arith.constant dense<0.000000e+00> : vector<16x32xf32>
    %242 = tpu.matmul %241, %152, %cst_106 {dimension_numbers = #tpu.dot_dimension_numbers<[1], [0], [0], [1], [0, 0, 1, 1], [], []>} : vector<16x64xf32>, vector<64x32xf32>, vector<16x32xf32> -> vector<16x32xf32>
    %243 = vector.broadcast %154 : vector<1x32xf32> to vector<16x32xf32>
    %244 = arith.addf %242, %243 : vector<16x32xf32>
    %245 = arith.addf %236, %244 : vector<16x32xf32>
    %cst_107 = arith.constant dense<0.000000e+00> : vector<16xf32>
    %246 = vector.multi_reduction <add>, %245, %cst_107 [1] : vector<16x32xf32> to vector<16xf32>
    %247 = vector.shape_cast %246 : vector<16xf32> to vector<16x1xf32>
    %cst_108 = arith.constant 3.200000e+01 : f32
    %248 = vector.broadcast %cst_108 : f32 to vector<16x1xf32>
    %249 = arith.divf %247, %248 : vector<16x1xf32>
    %250 = vector.broadcast %249 : vector<16x1xf32> to vector<16x32xf32>
    %251 = arith.subf %245, %250 : vector<16x32xf32>
    %252 = arith.mulf %251, %251 : vector<16x32xf32>
    %cst_109 = arith.constant dense<0.000000e+00> : vector<16xf32>
    %253 = vector.multi_reduction <add>, %252, %cst_109 [1] : vector<16x32xf32> to vector<16xf32>
    %254 = vector.shape_cast %253 : vector<16xf32> to vector<16x1xf32>
    %cst_110 = arith.constant 3.200000e+01 : f32
    %255 = vector.broadcast %cst_110 : f32 to vector<16x1xf32>
    %256 = arith.divf %254, %255 : vector<16x1xf32>
    %257 = vector.broadcast %249 : vector<16x1xf32> to vector<16x32xf32>
    %258 = arith.subf %245, %257 : vector<16x32xf32>
    %cst_111 = arith.constant 9.99999974E-6 : f32
    %259 = vector.broadcast %cst_111 : f32 to vector<16x1xf32>
    %260 = arith.addf %256, %259 : vector<16x1xf32>
    %261 = math.rsqrt %260 : vector<16x1xf32>
    %262 = vector.broadcast %261 : vector<16x1xf32> to vector<16x32xf32>
    %263 = arith.mulf %258, %262 : vector<16x32xf32>
    %264 = vector.broadcast %156 : vector<1x32xf32> to vector<16x32xf32>
    %265 = arith.mulf %263, %264 : vector<16x32xf32>
    %266 = vector.broadcast %158 : vector<1x32xf32> to vector<16x32xf32>
    %267 = arith.addf %265, %266 : vector<16x32xf32>
    %c0_112 = arith.constant 0 : index
    %c0_113 = arith.constant 0 : index
    %268 = vector.load %arg14[%c0_112, %c0_113] : memref<32x128xf32, #tpu.memory_space<vmem>>, vector<32x128xf32>
    %cst_114 = arith.constant dense<0.000000e+00> : vector<16x128xf32>
    %269 = tpu.matmul %267, %268, %cst_114 {dimension_numbers = #tpu.dot_dimension_numbers<[1], [0], [0], [1], [0, 0, 1, 1], [], []>} : vector<16x32xf32>, vector<32x128xf32>, vector<16x128xf32> -> vector<16x128xf32>
    %c0_115 = arith.constant 0 : index
    %c0_116 = arith.constant 0 : index
    %270 = vector.load %arg15[%c0_115, %c0_116] : memref<1x128xf32, #tpu.memory_space<vmem>>, vector<1x128xf32>
    %271 = vector.broadcast %270 : vector<1x128xf32> to vector<16x128xf32>
    %272 = arith.addf %269, %271 : vector<16x128xf32>
    %c0_117 = arith.constant 0 : index
    %c0_118 = arith.constant 0 : index
    %273 = vector.load %arg16[%c0_117, %c0_118] : memref<16x128xf32, #tpu.memory_space<vmem>>, vector<16x128xf32>
    tpu.vector_store %arg16[%c0_117, %c0_118], %272 {strides = array<i32>} : memref<16x128xf32, #tpu.memory_space<vmem>>, vector<16x128xf32>,
    return
  }
  func.func @transform_0(%arg0: i32) -> (i32, i32, i32) {
    %c0_i32 = arith.constant 0 : i32
    %c0_i32_0 = arith.constant 0 : i32
    %c0_i32_1 = arith.constant 0 : i32
    %c0_i32_2 = arith.constant 0 : i32
    return %c0_i32, %c0_i32_0, %c0_i32_1 : i32, i32, i32
  }
  func.func @transform_1(%arg0: i32) -> (i32, i32, i32) {
    %c0_i32 = arith.constant 0 : i32
    %c0_i32_0 = arith.constant 0 : i32
    %c0_i32_1 = arith.constant 0 : i32
    %c0_i32_2 = arith.constant 0 : i32
    return %c0_i32, %c0_i32_0, %c0_i32_1 : i32, i32, i32
  }
  func.func @transform_2(%arg0: i32) -> (i32, i32, i32) {
    %c0_i32 = arith.constant 0 : i32
    %c0_i32_0 = arith.constant 0 : i32
    %c0_i32_1 = arith.constant 0 : i32
    %c0_i32_2 = arith.constant 0 : i32
    return %c0_i32, %c0_i32_0, %c0_i32_1 : i32, i32, i32
  }
  func.func @transform_3(%arg0: i32) -> (i32, i32, i32) {
    %c0_i32 = arith.constant 0 : i32
    %c0_i32_0 = arith.constant 0 : i32
    %c0_i32_1 = arith.constant 0 : i32
    %c0_i32_2 = arith.constant 0 : i32
    return %c0_i32, %c0_i32_0, %c0_i32_1 : i32, i32, i32
  }
  func.func @transform_4(%arg0: i32) -> (i32, i32, i32) {
    %c0_i32 = arith.constant 0 : i32
    %c0_i32_0 = arith.constant 0 : i32
    %c0_i32_1 = arith.constant 0 : i32
    %c0_i32_2 = arith.constant 0 : i32
    return %c0_i32, %c0_i32_0, %c0_i32_1 : i32, i32, i32
  }
  func.func @transform_5(%arg0: i32) -> (i32, i32, i32) {
    %c0_i32 = arith.constant 0 : i32
    %c0_i32_0 = arith.constant 0 : i32
    %c0_i32_1 = arith.constant 0 : i32
    %c0_i32_2 = arith.constant 0 : i32
    return %c0_i32, %c0_i32_0, %c0_i32_1 : i32, i32, i32
  }
  func.func @transform_6(%arg0: i32) -> (i32, i32, i32) {
    %c0_i32 = arith.constant 0 : i32
    %c0_i32_0 = arith.constant 0 : i32
    %c0_i32_1 = arith.constant 0 : i32
    %c0_i32_2 = arith.constant 0 : i32
    return %c0_i32, %c0_i32_0, %c0_i32_1 : i32, i32, i32
  }
  func.func @transform_7(%arg0: i32) -> (i32, i32, i32) {
    %c0_i32 = arith.constant 0 : i32
    %c0_i32_0 = arith.constant 0 : i32
    %c0_i32_1 = arith.constant 0 : i32
    %c0_i32_2 = arith.constant 0 : i32
    return %c0_i32, %c0_i32_0, %c0_i32_1 : i32, i32, i32
  }
  func.func @transform_8(%arg0: i32) -> (i32, i32, i32) {
    %c0_i32 = arith.constant 0 : i32
    %c0_i32_0 = arith.constant 0 : i32
    %c0_i32_1 = arith.constant 0 : i32
    %c0_i32_2 = arith.constant 0 : i32
    return %c0_i32, %c0_i32_0, %c0_i32_1 : i32, i32, i32
  }
  func.func @transform_9(%arg0: i32) -> (i32, i32, i32) {
    %c0_i32 = arith.constant 0 : i32
    %c0_i32_0 = arith.constant 0 : i32
    %c0_i32_1 = arith.constant 0 : i32
    %c0_i32_2 = arith.constant 0 : i32
    return %c0_i32, %c0_i32_0, %c0_i32_1 : i32, i32, i32
  }
  func.func @transform_10(%arg0: i32) -> (i32, i32, i32) {
    %c0_i32 = arith.constant 0 : i32
    %c0_i32_0 = arith.constant 0 : i32
    %c0_i32_1 = arith.constant 0 : i32
    %c0_i32_2 = arith.constant 0 : i32
    return %c0_i32, %c0_i32_0, %c0_i32_1 : i32, i32, i32
  }
  func.func @transform_11(%arg0: i32) -> (i32, i32, i32) {
    %c0_i32 = arith.constant 0 : i32
    %c0_i32_0 = arith.constant 0 : i32
    %c0_i32_1 = arith.constant 0 : i32
    %c0_i32_2 = arith.constant 0 : i32
    return %c0_i32, %c0_i32_0, %c0_i32_1 : i32, i32, i32
  }
  func.func @transform_12(%arg0: i32) -> (i32, i32, i32) {
    %c0_i32 = arith.constant 0 : i32
    %c0_i32_0 = arith.constant 0 : i32
    %c0_i32_1 = arith.constant 0 : i32
    %c0_i32_2 = arith.constant 0 : i32
    return %c0_i32, %c0_i32_0, %c0_i32_1 : i32, i32, i32
  }
  func.func @transform_13(%arg0: i32) -> (i32, i32) {
    %c0_i32 = arith.constant 0 : i32
    %c0_i32_0 = arith.constant 0 : i32
    %c0_i32_1 = arith.constant 0 : i32
    return %c0_i32, %c0_i32_0 : i32, i32
  }
  func.func @transform_14(%arg0: i32) -> (i32, i32) {
    %c0_i32 = arith.constant 0 : i32
    %c0_i32_0 = arith.constant 0 : i32
    %c0_i32_1 = arith.constant 0 : i32
    return %c0_i32, %c0_i32_0 : i32, i32
  }
  func.func @transform_15(%arg0: i32) -> (i32, i32) {
    %c0_i32 = arith.constant 0 : i32
    %c0_i32_0 = arith.constant 0 : i32
    %c0_i32_1 = arith.constant 0 : i32
    return %c0_i32, %c0_i32_0 : i32, i32
  }
}

</mosaic_0001>

<bundles_post_ra>
// kernel: transformer_classifier.1
= control target key start
LH: loop header
LB: loop body
LE: loop exit
PB: predicated region body
PF: predicated region fallthrough
CT: control target
= control target key end

     0   :  { %20 = vsyncpa [#allocation3], 0  ;;  %s5424_s0 = inlined_call_operand.hbm [shape: f32[2,8,32], index: 0, kind: input, shape index: {}]   ;;  %s5425_s1 = inlined_call_operand.vmem [shape: f32[2,32,96], index: 1, kind: input, shape index: {}]   ;;  %s5426_s2 = inlined_call_operand.vmem [shape: f32[2,1,96], index: 2, kind: input, shape index: {}]   ;;  %s5427_s3 = inlined_call_operand.vmem [shape: f32[2,32,32], index: 3, kind: input, shape index: {}]   ;;  %s5428_s4 = inlined_call_operand.vmem [shape: f32[2,1,32], index: 4, kind: input, shape index: {}]   ;;  %s5429_s5 = inlined_call_operand.vmem [shape: f32[2,1,32], index: 5, kind: input, shape index: {}]   ;;  %s5430_s6 = inlined_call_operand.vmem [shape: f32[2,1,32], index: 6, kind: input, shape index: {}]   ;;  %s5431_s7 = inlined_call_operand.vmem [shape: f32[2,32,64], index: 7, kind: input, shape index: {}]   ;;  %s5432_s8 = inlined_call_operand.hbm [shape: f32[2,1,64], index: 8, kind: input, shape index: {}]   ;;  %s5433_s9 = inlined_call_operand.vmem [shape: f32[2,64,32], index: 9, kind: input, shape index: {}]   ;;  %s5434_s10 = inlined_call_operand.hbm [shape: f32[2,1,32], index: 10, kind: input, shape index: {}]   ;;  %s5435_s11 = inlined_call_operand.vmem [shape: f32[2,1,32], index: 11, kind: input, shape index: {}]   ;;  %s5436_s12 = inlined_call_operand.vmem [shape: f32[2,1,32], index: 12, kind: input, shape index: {}]   ;;  %s5437_s13 = inlined_call_operand.hbm [shape: f32[32,128], index: 13, kind: input, shape index: {}]   ;;  %s5438_s14 = inlined_call_operand.vmem [shape: f32[1,128], index: 14, kind: input, shape index: {}]   ;;  %s5439_s15 = inlined_call_operand.vmem [shape: f32[16,128], index: 15, kind: output, shape index: {}]  }
   0x1   :  { %21 = vsyncpa [#allocation5], 0 }
   0x2   :  { %22 = vsyncpa [#allocation8], 0  ;;  %s4686_s18 = smov [#allocation4]   ;;  %s4592_s22 = scalar_lea.hbm %s5432_s8, 32 }
   0x3   :  { %s54_s19 = sshll.u32 %s4686_s18, 4  ;;  %p4593_p0 = scmp.ne.s32.totalorder %s5432_s8, %s4592_s22  ;;  %s55_s19 = int_to_ptr.vmem [resolvable:$true] %s54_s19 }
   0x4   :  { %p4596_p1 = scmp.lt.u32.totalorder %s4592_s22, %s5432_s8 }
   0x6   :  { %p4598_p2 = pnand %p4596_p1, %p4593_p0 }
   0x8   :  { %4601 = shalt.err (!%p4598_p2)
}
   0x9   :  { %s4602_s27 = scalar_lea.vmem %s55_s19, 32  ;;  %p4607_p4 = scmp.lt.s32.totalorder %s55_s19, %s55_s19 }
   0xa   :  { %p4603_p3 = scmp.ne.s32.totalorder %s55_s19, %s4602_s27  ;;  %p4608_p5 = scmp.lt.s32.totalorder %s4602_s27, %s4602_s27 }
   0xc   :  { %p4609_p6 = por %p4608_p5, %p4607_p4 }
   0xe   :  { %p4610_p7 = pnand %p4609_p6, %p4603_p3 }
  0x10   :  { %4613 = shalt.err (!%p4610_p7)
}
  0x11   :  { %s5440_s28 = smov 16   ;;  %s5442_s29 = smov 1  }
  0x12   :  { %60 = dma.hbm_to_vmem [thread:$0]  %s5432_s8, 32, %s55_s19, [#allocation5], %s5440_s28, %s5440_s28, %s5442_s29  }
  0x13   :  { %s4689_s17 = smov [#allocation2]   ;;  %s4614_s22 = scalar_lea.hbm %s5424_s0, 256 }
  0x14   :  { %s28_s18 = sshll.u32 %s4689_s17, 4  ;;  %p4615_p8 = scmp.ne.s32.totalorder %s5424_s0, %s4614_s22  ;;  %s29_s18 = int_to_ptr.vmem [resolvable:$true] %s28_s18 }
  0x15   :  { %p4618_p9 = scmp.lt.u32.totalorder %s4614_s22, %s5424_s0 }
  0x17   :  { %p4620_p10 = pnand %p4618_p9, %p4615_p8 }
  0x19   :  { %4623 = shalt.err (!%p4620_p10)
}
  0x1a   :  { %s4624_s27 = scalar_lea.vmem %s29_s18, 256  ;;  %p4629_p12 = scmp.lt.s32.totalorder %s29_s18, %s29_s18 }
  0x1b   :  { %p4625_p11 = scmp.ne.s32.totalorder %s29_s18, %s4624_s27  ;;  %p4630_p13 = scmp.lt.s32.totalorder %s4624_s27, %s4624_s27 }
  0x1d   :  { %p4631_p0 = por %p4630_p13, %p4629_p12 }
  0x1f   :  { %p4632_p1 = pnand %p4631_p0, %p4625_p11 }
  0x21   :  { %4635 = shalt.err (!%p4632_p1)
}
  0x22   :  { %s4690_s8 = smov 128   ;;  %s4691_s19 = smov 8  }
  0x23   :  { %34 = dma.hbm_to_vmem [thread:$0]  %s5424_s0, 256, %s29_s18, [#allocation3], %s4690_s8, %s4690_s8, %s4691_s19  }
  0x24   :  { %s4692_s17 = smov [#allocation6]   ;;  %s4693_s21 = smov [#allocation7]  }
  0x25   :  { %s68_s20 = sshll.u32 %s4692_s17, 4  ;;  %s84_s22 = sshll.u32 %s4693_s21, 4  ;;  %s69_s20 = int_to_ptr.vmem [resolvable:$true] %s68_s20  ;;  %s4812_s22 = int_to_ptr.vmem [resolvable:$true] %s84_s22 }
  0x26   :  { %s4636_s25 = scalar_lea.hbm %s5434_s10, 32 }
  0x27   :  { %p4637_p2 = scmp.ne.s32.totalorder %s5434_s10, %s4636_s25  ;;  %p4640_p3 = scmp.lt.u32.totalorder %s4636_s25, %s5434_s10 }
  0x29   :  { %p4642_p4 = pnand %p4640_p3, %p4637_p2 }
  0x2b   :  { %4645 = shalt.err (!%p4642_p4)
}
  0x2c   :  { %s4646_s0 = scalar_lea.vmem %s69_s20, 32  ;;  %p4651_p6 = scmp.lt.s32.totalorder %s69_s20, %s69_s20 }
  0x2d   :  { %p4647_p5 = scmp.ne.s32.totalorder %s69_s20, %s4646_s0  ;;  %p4652_p7 = scmp.lt.s32.totalorder %s4646_s0, %s4646_s0 }
  0x2f   :  { %p4653_p8 = por %p4652_p7, %p4651_p6 }
  0x31   :  { %p4654_p9 = pnand %p4653_p8, %p4647_p5 }
  0x33   :  { %4657 = shalt.err (!%p4654_p9)
}
  0x34   :  { %s5443_s18 = smov 1   ;;  %s5444_s30 = smov 16  }
  0x35   :  { %74 = dma.hbm_to_vmem [thread:$0]  %s5434_s10, 32, %s69_s20, [#allocation5], %s5444_s30, %s5444_s30, %s5443_s18  }
  0x36   :  { %s4658_s28 = scalar_lea.hbm %s5437_s13, 512 }
  0x37   :  { %p4659_p10 = scmp.ne.s32.totalorder %s5437_s13, %s4658_s28  ;;  %p4662_p11 = scmp.lt.u32.totalorder %s4658_s28, %s5437_s13 }
  0x39   :  { %p4664_p12 = pnand %p4662_p11, %p4659_p10 }
  0x3b   :  { %4667 = shalt.err (!%p4664_p12)
}
  0x3c   :  { %s4668_s27 = scalar_lea.vmem %s4812_s22, 512  ;;  %p4673_p0 = scmp.lt.s32.totalorder %s4812_s22, %s4812_s22 }
  0x3d   :  { %p4669_p13 = scmp.ne.s32.totalorder %s4812_s22, %s4668_s27  ;;  %p4674_p1 = scmp.lt.s32.totalorder %s4668_s27, %s4668_s27 }
  0x3f   :  { %p4675_p2 = por %p4674_p1, %p4673_p0 }
  0x41   :  { %p4676_p3 = pnand %p4675_p2, %p4669_p13 }
  0x43   :  { %4679 = shalt.err (!%p4676_p3)
}
  0x44   :  { %90 = dma.hbm_to_vmem [thread:$0]  %s5437_s13, 512, %s4812_s22, [#allocation8], %s4690_s8, %s4690_s8, %s4691_s19  }
  0x45   :  { %4680 = dma.done.wait [#allocation3], 256  }
  0x46   :  { %4681 = vsyncadd [#allocation3], 4294967040 }
  0x47   :  { %4682 = dma.done.wait [#allocation5], 64  }
  0x48   :  { %4683 = vsyncadd [#allocation5], 4294967232 }
  0x49   :  { %4684 = dma.done.wait [#allocation8], 512  }
  0x4a   :  { %4685 = vsyncadd [#allocation8], 4294966784  ;;  %vm141_vm0 = vcmask 261120   ;;  %v107_v0 = vld [vmem:[%s5425_s1] sm:$0xff]  ;;  %v108_v1 = vld [vmem:[%s5425_s1 + $0x8] sm:$0xff]  ;;  %v4694_v10 = vmov 0.0  }
  0x4b   :  { %v109_v2 = vld [vmem:[%s5425_s1 + $0x10] sm:$0xff]  ;;  %v4408_v3 = vpack.c.bf16 %v108_v1, %v107_v0  ;;  %v110_v4 = vld [vmem:[%s5425_s1 + $0x18] sm:$0xff]  ;;  %v4861_v5 = vld [vmem:[#allocation2] sm:$0xff]  ;;  %4144 = vmatprep.subr.mxu1 %v4694_v10  ;;  %s4695_s29 = smov 112   ;;  %s4696_s24 = smov 120   ;;  %vm4697_vm1 = vmmov 0  }
  0x4c   :  { %v4412_v6 = vpack.c.bf16 %v110_v4, %v109_v2  ;;  %4141 = vmatprep.mubr.msk.f32.mxu0 %vm141_vm0, %v4861_v5  ;;  %v4865_v7 = vld [vmem:[#allocation2 + $0x8] sm:$0xff]  ;;  %v3898_v8 = vld [vmem:[%s5426_s2] ss:$0 sm:$0xff]  ;;  %4146 = vmatprep.mubr.msk.f32.mxu1 %vm4697_vm1, %v4694_v10  ;;  %s4698_s25 = smov 104   ;;  %s4699_s26 = smov 96   ;;  %vm253_vm2 = vcmask 64512  }
  0x4d   :  { %4409 = vmatprep.subr.bf16.mxu0 %v4408_v3  ;;  %s4700_s27 = smov 64   ;;  %s4701_s13 = smov 24   ;;  %vm1590_vm3 = vcmask 130048   ;;  %vm1593_vm4 = vcmask 195584   ;;  %vm1823_vm5 = vcmask 523264  }
  0x4e   :  { %4411 = vmatpush3.bf16.msra.mxu0 %v4408_v3 }
  0x4f   :  { %4413 = vmatprep.subr.bf16.mxu0 %v4412_v6 }
  0x52   :  { %4415 = vmatpush3.bf16.msra.mxu0 %v4412_v6 }
  0x53   :  { %4164 = vmatprep.subr.mxu0 %v4694_v10 }
  0x55   :  { %4142 = vmatmul.mubr.msk.f32.vlgmr.msra.gmra.mrb[0].mxu0 %vm141_vm0, %v4865_v7 }
  0x56   :  { %4166 = vmatprep.mubr.msk.f32.mxu0 %vm4697_vm1, %v4694_v10 }
 0x128   :  { %v4143_v9 = vpop.f32.mrb[0].mxu0 }
 0x129   :  { %v214_v11 = vpop.f32.mrb[1].mxu0  ;;  %v4884_v13 = vadd.f32 %v4143_v9, %v3898_v8 }
 0x12a   :  { %v4874_v12 = vadd.f32 %v3898_v8, %v214_v11 }
 0x12b   :  { %v244_v23 = vmul.f32 0.35355338, %v4884_v13 }
 0x12c   :  { %231 = vrot.lane.b32.xlu1 %v4874_v12, %s4695_s29  ;;  %225 = vrot.lane.b32.xlu0 %v4874_v12, %s4696_s24  ;;  %v243_v21 = vmul.f32 0.35355338, %v4874_v12 }
 0x130   :  { %233 = vrot.lane.b32.xlu1 %v4884_v13, %s4695_s29  ;;  %227 = vrot.lane.b32.xlu0 %v4884_v13, %s4696_s24 }
 0x134   :  { %239 = vrot.lane.b32.xlu1 %v4884_v13, %s4698_s25  ;;  %237 = vrot.lane.b32.xlu0 %v4874_v12, %s4698_s25 }
 0x138   :  { %329 = vrot.lane.b32.xlu1 %v4884_v13, %s4699_s26  ;;  %251 = vrot.lane.b32.xlu0 %v4874_v12, %s4699_s26 }
 0x19e   :  { %v4898_v14 = vpop.permute.xlu1 %231  ;;  %v4900_v15 = vpop.permute.xlu0 %225 }
 0x19f   :  { %406 = vrot.lane.b32.xlu0 %v4900_v15, %s4699_s26  ;;  %v245_v25 = vmul.f32 0.35355338, %v4900_v15  ;;  %v247_v28 = vmul.f32 0.35355338, %v4898_v14 }
 0x1a2   :  { %v4904_v16 = vpop.permute.xlu1 %233  ;;  %v4906_v17 = vpop.permute.xlu0 %227 }
 0x1a3   :  { %560 = vrot.lane.b32.xlu0 %v4898_v14, %s4699_s26  ;;  %483 = vrot.lane.b32.xlu1 %v4906_v17, %s4699_s26  ;;  %v246_v29 = vmul.f32 0.35355338, %v4906_v17  ;;  %v248_v32 = vmul.f32 0.35355338, %v4904_v16 }
 0x1a6   :  { %v4912_v18 = vpop.permute.xlu0 %237  ;;  %v4918_v19 = vpop.permute.xlu1 %239 }
 0x1a7   :  { %637 = vrot.lane.b32.xlu1 %v4904_v16, %s4699_s26  ;;  %714 = vrot.lane.b32.xlu0 %v4912_v18, %s4699_s26  ;;  %v249_v33 = vmul.f32 0.35355338, %v4912_v18  ;;  %v250_v35 = vmul.f32 0.35355338, %v4918_v19 }
 0x1aa   :  { %v252_v20 = vpop.permute.xlu0 %251  ;;  %v330_v22 = vpop.permute.xlu1 %329 }
 0x1ab   :  { %791 = vrot.lane.b32.xlu1 %v4918_v19, %s4699_s26  ;;  %4145 = vmatpush3.xpose.msk.msra.mxu1 %vm253_vm2, %v252_v20 }
 0x1ac   :  { %4149 = vmatprep.subr.mxu1 %v4694_v10 }
 0x1ae   :  { %4147 = vmatmul.mubr.msk.f32.vlgmr.msra.gmra.mrb[0].mxu1 %vm253_vm2, %v243_v21 }
 0x1af   :  { %4150 = vmatpush3.xpose.msk.msra.mxu1 %vm253_vm2, %v330_v22  ;;  %4151 = vmatprep.mubr.msk.f32.mxu1 %vm4697_vm1, %v4694_v10 }
 0x1b0   :  { %4154 = vmatprep.subr.mxu1 %v4694_v10 }
 0x1b2   :  { %4152 = vmatmul.mubr.msk.f32.vlgmr.msra.gmra.mrb[2].mxu1 %vm253_vm2, %v244_v23 }
 0x1b3   :  { %4156 = vmatprep.mubr.msk.f32.mxu1 %vm4697_vm1, %v4694_v10 }
 0x211   :  { %v407_v24 = vpop.permute.xlu0 %406 }
 0x212   :  { %4155 = vmatpush3.xpose.msk.msra.mxu1 %vm253_vm2, %v407_v24 }
 0x213   :  { %4159 = vmatprep.subr.mxu1 %v4694_v10 }
 0x215   :  { %v484_v26 = vpop.permute.xlu1 %483  ;;  %v561_v27 = vpop.permute.xlu0 %560  ;;  %4157 = vmatmul.mubr.msk.f32.vlgmr.msra.gmra.mrb[4].mxu1 %vm253_vm2, %v245_v25 }
 0x216   :  { %4160 = vmatpush3.xpose.msk.msra.mxu1 %vm253_vm2, %v484_v26  ;;  %4165 = vmatpush3.xpose.msk.msra.mxu0 %vm253_vm2, %v561_v27 }
 0x217   :  { %4161 = vmatprep.mubr.msk.f32.mxu1 %vm4697_vm1, %v4694_v10  ;;  %4174 = vmatprep.subr.mxu0 %v4694_v10 }
 0x218   :  { %4169 = vmatprep.subr.mxu1 %v4694_v10 }
 0x219   :  { %v638_v30 = vpop.permute.xlu1 %637  ;;  %4167 = vmatmul.mubr.msk.f32.vlgmr.msra.gmra.mrb[2].mxu0 %vm253_vm2, %v247_v28  ;;  %v715_v31 = vpop.permute.xlu0 %714  ;;  %4162 = vmatmul.mubr.msk.f32.vlgmr.msra.gmra.mrb[6].mxu1 %vm253_vm2, %v246_v29 }
 0x21a   :  { %4170 = vmatpush3.xpose.msk.msra.mxu1 %vm253_vm2, %v638_v30  ;;  %4175 = vmatpush3.xpose.msk.msra.mxu0 %vm253_vm2, %v715_v31 }
 0x21b   :  { %4171 = vmatprep.mubr.msk.f32.mxu1 %vm4697_vm1, %v4694_v10  ;;  %4176 = vmatprep.mubr.msk.f32.mxu0 %vm4697_vm1, %v4694_v10 }
 0x21c   :  { %4179 = vmatprep.subr.mxu1 %v4694_v10  ;;  %4184 = vmatprep.subr.mxu0 %v4694_v10 }
 0x21d   :  { %v792_v34 = vpop.permute.xlu1 %791  ;;  %4172 = vmatmul.mubr.msk.f32.vlgmr.msra.gmra.mrb[8].mxu1 %vm253_vm2, %v248_v32  ;;  %4177 = vmatmul.mubr.msk.f32.vlgmr.msra.gmra.mrb[4].mxu0 %vm253_vm2, %v249_v33 }
 0x21e   :  { %4180 = vmatpush3.xpose.msk.msra.mxu1 %vm253_vm2, %v792_v34  ;;  %4181 = vmatprep.mubr.msk.f32.mxu1 %vm4697_vm1, %v4694_v10 }
 0x21f   :  { %4189 = vmatprep.subr.mxu1 %v4694_v10  ;;  %4186 = vmatprep.mubr.msk.f32.mxu0 %vm4697_vm1, %v4694_v10 }
 0x221   :  { %4182 = vmatmul.mubr.msk.f32.vlgmr.msra.gmra.mrb[10].mxu1 %vm253_vm2, %v250_v35 }
 0x222   :  { %4191 = vmatprep.mubr.msk.f32.mxu1 %vm4697_vm1, %v4694_v10 }
 0x281   :  { %v325_v36 = vpop.f32.mrb[0].mxu1 }
 0x282   :  { %v4148_v37 = vpop.f32.mrb[1].mxu1  ;;  %v868_v38 = vsel %vm253_vm2, %v325_v36, -inf }
 0x283   :  { %869 = vmax.xlane.f32.xlu0 %v868_v38 }
 0x285   :  { %v402_v39 = vpop.f32.mrb[2].mxu1 }
 0x286   :  { %v4153_v40 = vpop.f32.mrb[3].mxu1  ;;  %v871_v41 = vsel %vm253_vm2, %v402_v39, -inf }
 0x287   :  { %872 = vmax.xlane.f32.xlu1 %v871_v41 }
 0x2e8   :  { %v479_v42 = vpop.f32.mrb[4].mxu1 }
 0x2e9   :  { %v4158_v43 = vpop.f32.mrb[5].mxu1  ;;  %v874_v44 = vsel %vm253_vm2, %v479_v42, -inf }
 0x2ea   :  { %875 = vmax.xlane.f32.xlu0 %v874_v44 }
 0x2ec   :  { %v556_v45 = vpop.f32.mrb[6].mxu1  ;;  %v633_v46 = vpop.f32.mrb[2].mxu0 }
 0x2ed   :  { %v4163_v47 = vpop.f32.mrb[7].mxu1  ;;  %v4168_v48 = vpop.f32.mrb[3].mxu0  ;;  %v880_v49 = vsel %vm253_vm2, %v633_v46, -inf  ;;  %v877_v50 = vsel %vm253_vm2, %v556_v45, -inf }
 0x2ee   :  { %881 = vmax.xlane.f32.xlu1 %v880_v49  ;;  %878 = vmax.xlane.f32.xlu0 %v877_v50 }
 0x2f0   :  { %v710_v51 = vpop.f32.mrb[8].mxu1  ;;  %v787_v52 = vpop.f32.mrb[4].mxu0 }
 0x2f1   :  { %v4173_v53 = vpop.f32.mrb[9].mxu1  ;;  %v4178_v54 = vpop.f32.mrb[5].mxu0  ;;  %v886_v55 = vsel %vm253_vm2, %v787_v52, -inf  ;;  %v883_v56 = vsel %vm253_vm2, %v710_v51, -inf }
 0x2f2   :  { %887 = vmax.xlane.f32.xlu1 %v886_v55  ;;  %884 = vmax.xlane.f32.xlu0 %v883_v56 }
 0x2f4   :  { %v864_v57 = vpop.f32.mrb[10].mxu1 }
 0x2f5   :  { %v4183_v58 = vpop.f32.mrb[11].mxu1  ;;  %v889_v59 = vsel %vm253_vm2, %v864_v57, -inf }
 0x2f6   :  { %890 = vmax.xlane.f32.xlu0 %v889_v59 }
 0x303   :  { %956 = vrot.lane.b32.xlu1 %v4874_v12, %s4700_s27 }
 0x307   :  { %1108 = vrot.lane.b32.xlu1 %v4900_v15, %s4700_s27 }
 0x30b   :  { %1184 = vrot.lane.b32.xlu1 %v4906_v17, %s4700_s27 }
 0x30c   :  { %1032 = vrot.lane.b32.xlu0 %v4884_v13, %s4700_s27 }
 0x30f   :  { %1336 = vrot.lane.b32.xlu1 %v4904_v16, %s4700_s27 }
 0x310   :  { %1260 = vrot.lane.b32.xlu0 %v4898_v14, %s4700_s27  ;;  %v870_v62 = vpop.xlane.xlu0 %869 }
 0x311   :  { %v892_v63 = vsub.f32 %v325_v36, %v870_v62 }
 0x313   :  { %v900_v1 = vmul.f32 1.442695, %v892_v63 }
 0x314   :  { %v873_v60 = vpop.xlane.xlu1 %872 }
 0x315   :  { %v893_v61 = vsub.f32 %v402_v39, %v873_v60 }
 0x317   :  { %v902_v0 = vmul.f32 1.442695, %v893_v61 }
 0x319   :  { %4512 = vpow2.f32 %v902_v0 }
 0x31a   :  { %4514 = vpow2.f32 %v900_v1 }
 0x323   :  { %v4990_v2 = vpop.eup %4512 }
 0x324   :  { %v919_v3 = vsel %vm253_vm2, %v4990_v2, 0.0  ;;  %v4994_v4 = vpop.eup %4514 }
 0x325   :  { %v916_v6 = vsel %vm253_vm2, %v4994_v4, 0.0 }
 0x32f   :  { %920 = vadd.xlane.f32.xlu0 %v919_v3 }
 0x333   :  { %917 = vadd.xlane.f32.xlu1 %v916_v6 }
 0x377   :  { %v876_v8 = vpop.xlane.xlu0 %875 }
 0x378   :  { %v894_v9 = vsub.f32 %v479_v42, %v876_v8 }
 0x37a   :  { %v904_v11 = vmul.f32 1.442695, %v894_v9 }
 0x37b   :  { %v882_v12 = vpop.xlane.xlu1 %881  ;;  %v879_v13 = vpop.xlane.xlu0 %878 }
 0x37c   :  { %4516 = vpow2.f32 %v904_v11  ;;  %v896_v14 = vsub.f32 %v633_v46, %v882_v12  ;;  %v895_v15 = vsub.f32 %v556_v45, %v879_v13 }
 0x37e   :  { %v908_v16 = vmul.f32 1.442695, %v896_v14  ;;  %v906_v17 = vmul.f32 1.442695, %v895_v15  ;;  %v112_v14 = vld [vmem:[%s5427_s3] sm:$0xff]  ;;  %v113_v15 = vld [vmem:[%s5427_s3 + $0x8] sm:$0xff] }
 0x37f   :  { %v888_v20 = vpop.xlane.xlu1 %887  ;;  %v885_v21 = vpop.xlane.xlu0 %884 }
 0x380   :  { %4518 = vpow2.f32 %v908_v16  ;;  %v898_v22 = vsub.f32 %v787_v52, %v888_v20  ;;  %v897_v23 = vsub.f32 %v710_v51, %v885_v21  ;;  %v4416_v16 = vpack.c.bf16 %v113_v15, %v112_v14  ;;  %v115_v20 = vld [vmem:[%s5427_s3 + $0x18] sm:$0xff] }
 0x381   :  { %4520 = vpow2.f32 %v906_v17  ;;  %v114_v17 = vld [vmem:[%s5427_s3 + $0x10] sm:$0xff] }
 0x382   :  { %v912_v24 = vmul.f32 1.442695, %v898_v22  ;;  %v910_v25 = vmul.f32 1.442695, %v897_v23  ;;  %v4420_v21 = vpack.c.bf16 %v115_v20, %v114_v17 }
 0x383   :  { %v957_v26 = vpop.permute.xlu1 %956  ;;  %v891_v27 = vpop.xlane.xlu0 %890 }
 0x384   :  { %4522 = vpow2.f32 %v912_v24  ;;  %v899_v28 = vsub.f32 %v864_v57, %v891_v27  ;;  %4185 = vmatpush3.msra.mxu0 %v957_v26 }
 0x385   :  { %4524 = vpow2.f32 %v910_v25  ;;  %4194 = vmatprep.subr.mxu0 %v4694_v10 }
 0x386   :  { %v4517_v29 = vpop.eup %4516  ;;  %v914_v30 = vmul.f32 1.442695, %v899_v28 }
 0x387   :  { %v1033_v31 = vpop.permute.xlu0 %1032  ;;  %v922_v32 = vsel %vm253_vm2, %v4517_v29, 0.0  ;;  %v1109_v43 = vpop.permute.xlu1 %1108 }
 0x388   :  { %4526 = vpow2.f32 %v914_v30  ;;  %923 = vadd.xlane.f32.xlu1 %v922_v32  ;;  %4190 = vmatpush3.msra.mxu1 %v1033_v31 }
 0x389   :  { %4199 = vmatprep.subr.mxu1 %v4694_v10 }
 0x38a   :  { %v4519_v33 = vpop.eup %4518 }
 0x38b   :  { %v4521_v34 = vpop.eup %4520  ;;  %v928_v35 = vsel %vm253_vm2, %v4519_v33, 0.0  ;;  %v1185_v44 = vpop.permute.xlu1 %1184 }
 0x38c   :  { %929 = vadd.xlane.f32.xlu1 %v928_v35  ;;  %v925_v36 = vsel %vm253_vm2, %v4521_v34, 0.0  ;;  %v1261_v45 = vpop.permute.xlu0 %1260 }
 0x38d   :  { %926 = vadd.xlane.f32.xlu0 %v925_v36 }
 0x38e   :  { %v4523_v37 = vpop.eup %4522 }
 0x38f   :  { %v4525_v38 = vpop.eup %4524  ;;  %v934_v39 = vsel %vm253_vm2, %v4523_v37, 0.0  ;;  %v1337_v46 = vpop.permute.xlu1 %1336 }
 0x390   :  { %935 = vadd.xlane.f32.xlu1 %v934_v39  ;;  %v931_v40 = vsel %vm253_vm2, %v4525_v38, 0.0 }
 0x391   :  { %932 = vadd.xlane.f32.xlu0 %v931_v40 }
 0x392   :  { %v5005_v41 = vpop.eup %4526 }
 0x393   :  { %v937_v42 = vsel %vm253_vm2, %v5005_v41, 0.0 }
 0x395   :  { %938 = vadd.xlane.f32.xlu0 %v937_v42 }
 0x3a1   :  { %1488 = vrot.lane.b32.xlu1 %v4918_v19, %s4700_s27 }
 0x3ab   :  { %1412 = vrot.lane.b32.xlu0 %v4912_v18, %s4700_s27 }
 0x3bc   :  { %v921_v47 = vpop.xlane.xlu0 %920 }
 0x3bd   :  { %4528 = vrcp.f32 %v921_v47 }
 0x3c0   :  { %v918_v48 = vpop.xlane.xlu1 %917 }
 0x3c1   :  { %4530 = vrcp.f32 %v918_v48 }
 0x3c7   :  { %v4529_v49 = vpop.eup %4528 }
 0x3c8   :  { %v943_v50 = vmul.f32 %v4529_v49, %v4990_v2 }
 0x3ca   :  { %4192 = vmatmul.mubr.msk.f32.vlgmr.msra.gmra.mrb[12].mxu1 %vm253_vm2, %v943_v50 }
 0x3cb   :  { %v4531_v51 = vpop.eup %4530  ;;  %4200 = vmatpush3.msra.mxu1 %v1185_v44  ;;  %4201 = vmatprep.mubr.msk.f32.mxu1 %vm4697_vm1, %v4694_v10 }
 0x3cc   :  { %v941_v18 = vmul.f32 %v4531_v51, %v4994_v4  ;;  %4209 = vmatprep.subr.mxu1 %v4694_v10 }
 0x3ce   :  { %4187 = vmatmul.mubr.msk.f32.vlgmr.msra.gmra.mrb[6].mxu0 %vm253_vm2, %v941_v18 }
 0x3cf   :  { %4195 = vmatpush3.msra.mxu0 %v1109_v43  ;;  %4196 = vmatprep.mubr.msk.f32.mxu0 %vm4697_vm1, %v4694_v10 }
 0x3d0   :  { %4204 = vmatprep.subr.mxu0 %v4694_v10 }
 0x415   :  { %v924_v19 = vpop.xlane.xlu1 %923 }
 0x416   :  { %4532 = vrcp.f32 %v924_v19 }
 0x419   :  { %v930_v52 = vpop.xlane.xlu1 %929 }
 0x41a   :  { %4534 = vrcp.f32 %v930_v52  ;;  %v927_v53 = vpop.xlane.xlu0 %926 }
 0x41b   :  { %4536 = vrcp.f32 %v927_v53 }
 0x41d   :  { %v936_v54 = vpop.xlane.xlu1 %935 }
 0x41e   :  { %4538 = vrcp.f32 %v936_v54  ;;  %v933_v55 = vpop.xlane.xlu0 %932 }
 0x41f   :  { %4540 = vrcp.f32 %v933_v55 }
 0x420   :  { %v4533_v56 = vpop.eup %4532 }
 0x421   :  { %v945_v57 = vmul.f32 %v4533_v56, %v4517_v29  ;;  %v1489_v4 = vpop.permute.xlu1 %1488 }
 0x422   :  { %v939_v58 = vpop.xlane.xlu0 %938 }
 0x423   :  { %4542 = vrcp.f32 %v939_v58  ;;  %4197 = vmatmul.mubr.msk.f32.vlgmr.msra.gmra.mrb[8].mxu0 %vm253_vm2, %v945_v57 }
 0x424   :  { %v4535_v59 = vpop.eup %4534  ;;  %4205 = vmatpush3.msra.mxu0 %v1261_v45  ;;  %4206 = vmatprep.mubr.msk.f32.mxu0 %vm4697_vm1, %v4694_v10 }
 0x425   :  { %v4537_v60 = vpop.eup %4536  ;;  %v949_v61 = vmul.f32 %v4535_v59, %v4519_v33  ;;  %4214 = vmatprep.subr.mxu0 %v4694_v10 }
 0x426   :  { %v947_v62 = vmul.f32 %v4537_v60, %v4521_v34  ;;  %v1413_v63 = vpop.permute.xlu0 %1412 }
 0x427   :  { %4207 = vmatmul.mubr.msk.f32.vlgmr.msra.gmra.mrb[10].mxu0 %vm253_vm2, %v949_v61 }
 0x428   :  { %v4539_v0 = vpop.eup %4538  ;;  %4202 = vmatmul.mubr.msk.f32.vlgmr.msra.gmra.mrb[14].mxu1 %vm253_vm2, %v947_v62  ;;  %4215 = vmatpush3.msra.mxu0 %v1413_v63  ;;  %v120_v62 = vld [vmem:[%s5431_s7 + $0x8] sm:$0xff] }
 0x429   :  { %v4541_v1 = vpop.eup %4540  ;;  %v953_v2 = vmul.f32 %v4539_v0, %v4523_v37  ;;  %4210 = vmatpush3.msra.mxu1 %v1337_v46  ;;  %4211 = vmatprep.mubr.msk.f32.mxu1 %vm4697_vm1, %v4694_v10  ;;  %v3925_v46 = vld [vmem:[%s5428_s4] ss:$0 sm:$0xff]  ;;  %v121_v0 = vld [vmem:[%s5431_s7 + $0x10] sm:$0xff] }
 0x42a   :  { %v951_v3 = vmul.f32 %v4541_v1, %v4525_v38  ;;  %4216 = vmatprep.mubr.msk.f32.mxu0 %vm4697_vm1, %v4694_v10  ;;  %4219 = vmatprep.subr.mxu1 %v4694_v10  ;;  %v122_v1 = vld [vmem:[%s5431_s7 + $0x18] sm:$0xff] }
 0x42b   :  { %4217 = vmatmul.mubr.msk.f32.vlgmr.msra.gmra.mrb[12].mxu0 %vm253_vm2, %v953_v2  ;;  %4417 = vmatprep.subr.bf16.mxu0 %v4416_v16  ;;  %v4428_v2 = vpack.c.bf16 %v122_v1, %v121_v0 }
 0x42c   :  { %4212 = vmatmul.mubr.msk.f32.vlgmr.msra.gmra.mrb[16].mxu1 %vm253_vm2, %v951_v3  ;;  %4419 = vmatpush3.bf16.msra.mxu0 %v4416_v16  ;;  %v124_v3 = vld [vmem:[%s5433_s9] sm:$0xff] }
 0x42d   :  { %v4543_v6 = vpop.eup %4542  ;;  %4220 = vmatpush3.msra.mxu1 %v1489_v4  ;;  %4221 = vmatprep.mubr.msk.f32.mxu1 %vm4697_vm1, %v4694_v10  ;;  %v125_v4 = vld [vmem:[%s5433_s9 + $0x8] sm:$0xff] }
 0x42e   :  { %v955_v8 = vmul.f32 %v4543_v6, %v5005_v41  ;;  %4421 = vmatprep.subr.bf16.mxu0 %v4420_v21  ;;  %v126_v6 = vld [vmem:[%s5433_s9 + $0x10] sm:$0xff] }
 0x430   :  { %4222 = vmatmul.mubr.msk.f32.vlgmr.msra.gmra.mrb[18].mxu1 %vm253_vm2, %v955_v8  ;;  %4423 = vmatpush3.bf16.msra.mxu0 %v4420_v21  ;;  %v4432_v8 = vpack.c.bf16 %v125_v4, %v124_v3 }
 0x432   :  { %4433 = vmatprep.subr.bf16.mxu0 %v4432_v8 }
 0x49d   :  { %v1104_v9 = vpop.f32.mrb[12].mxu1 }
 0x49e   :  { %v4193_v11 = vpop.f32.mrb[13].mxu1 }
 0x4a1   :  { %v1028_v12 = vpop.f32.mrb[6].mxu0 }
 0x4a2   :  { %v4188_v13 = vpop.f32.mrb[7].mxu0 }
 0x4a3   :  { %v129_v13 = vld [vmem:[%s5433_s9 + $0x28] sm:$0xff] }
 0x4f6   :  { %v1180_v22 = vpop.f32.mrb[8].mxu0 }
 0x4f7   :  { %v4198_v23 = vpop.f32.mrb[9].mxu0  ;;  %1566 = vrot.lane.b32.xlu0 %v1180_v22, %s4691_s19 }
 0x4fa   :  { %v1332_v24 = vpop.f32.mrb[10].mxu0 }
 0x4fb   :  { %v1256_v25 = vpop.f32.mrb[14].mxu1  ;;  %1574 = vrot.lane.b32.xlu0 %v1332_v24, %s5444_s30  ;;  %v4208_v26 = vpop.f32.mrb[11].mxu0  ;;  %v3928_v24 = vld [vmem:[%s5429_s5] ss:$0 sm:$0xff] }
 0x4fc   :  { %1568 = vrot.lane.b32.xlu1 %v1256_v25, %s4691_s19  ;;  %v4203_v27 = vpop.f32.mrb[15].mxu1  ;;  %v3929_v26 = vld [vmem:[%s5430_s6] ss:$0 sm:$0xff] }
 0x4fe   :  { %v1484_v28 = vpop.f32.mrb[12].mxu0 }
 0x4ff   :  { %v1408_v29 = vpop.f32.mrb[16].mxu1  ;;  %1582 = vrot.lane.b32.xlu0 %v1484_v28, %s4701_s13  ;;  %v4218_v30 = vpop.f32.mrb[13].mxu0 }
 0x500   :  { %1576 = vrot.lane.b32.xlu1 %v1408_v29, %s5444_s30  ;;  %v4213_v31 = vpop.f32.mrb[17].mxu1 }
 0x503   :  { %v1560_v32 = vpop.f32.mrb[18].mxu1 }
 0x504   :  { %1584 = vrot.lane.b32.xlu1 %v1560_v32, %s4701_s13  ;;  %v4223_v33 = vpop.f32.mrb[19].mxu1 }
 0x505   :  { %v130_v33 = vld [vmem:[%s5433_s9 + $0x30] sm:$0xff] }
 0x569   :  { %v1567_v34 = vpop.permute.xlu0 %1566 }
 0x56a   :  { %v1588_v37 = vsel %vm253_vm2, %v1028_v12, %v1567_v34  ;;  %v128_v12 = vld [vmem:[%s5433_s9 + $0x20] sm:$0xff]  ;;  %v131_v34 = vld [vmem:[%s5433_s9 + $0x38] sm:$0xff] }
 0x56b   :  { %v4440_v14 = vpack.c.bf16 %v129_v13, %v128_v12 }
 0x56d   :  { %v1575_v35 = vpop.permute.xlu0 %1574 }
 0x56e   :  { %v1569_v36 = vpop.permute.xlu1 %1568  ;;  %v1591_v38 = vsel %vm1590_vm3, %v1588_v37, %v1575_v35  ;;  %v4444_v35 = vpack.c.bf16 %v131_v34, %v130_v33 }
 0x56f   :  { %v1589_v42 = vsel %vm253_vm2, %v1104_v9, %v1569_v36  ;;  %v127_v9 = vld [vmem:[%s5433_s9 + $0x18] sm:$0xff]  ;;  %v3930_v36 = vld [vmem:[#allocation4] ss:$0 sm:$0xff] }
 0x570   :  { %v4436_v11 = vpack.c.bf16 %v127_v9, %v126_v6  ;;  %v3936_v9 = vld [vmem:[%s5435_s11] ss:$0 sm:$0xff] }
 0x571   :  { %v1583_v39 = vpop.permute.xlu0 %1582 }
 0x572   :  { %v1594_v40 = vsel %vm1593_vm4, %v1591_v38, %v1583_v39  ;;  %v1577_v41 = vpop.permute.xlu1 %1576 }
 0x573   :  { %4232 = vmatprep.mubr.msk.f32.mxu0 %vm141_vm0, %v1594_v40  ;;  %v1592_v43 = vsel %vm1590_vm3, %v1589_v42, %v1577_v41 }
 0x576   :  { %v1585_v44 = vpop.permute.xlu1 %1584 }
 0x577   :  { %v1595_v45 = vsel %vm1593_vm4, %v1592_v43, %v1585_v44  ;;  %v3933_v43 = vld [vmem:[#allocation6] ss:$0 sm:$0xff] }
 0x578   :  { %4233 = vmatmul.mubr.msk.f32.vlgmr.msra.gmra.mrb[14].mxu0 %vm141_vm0, %v1595_v45 }
 0x579   :  { %4435 = vmatpush3.bf16.msra.mxu0 %v4432_v8 }
 0x57a   :  { %4437 = vmatprep.subr.bf16.mxu0 %v4436_v11 }
 0x57d   :  { %4439 = vmatpush3.bf16.msra.mxu0 %v4436_v11 }
 0x57e   :  { %4441 = vmatprep.subr.bf16.mxu0 %v4440_v14 }
 0x581   :  { %4443 = vmatpush3.bf16.msra.mxu0 %v4440_v14  ;;  %v3937_v14 = vld [vmem:[%s5436_s12] ss:$0 sm:$0xff] }
 0x582   :  { %4445 = vmatprep.subr.bf16.mxu0 %v4444_v35 }
 0x585   :  { %4447 = vmatpush3.bf16.msra.mxu0 %v4444_v35 }
 0x586   :  { %4286 = vmatprep.subr.mxu0 %v4694_v10 }
 0x64b   :  { %v4234_v47 = vpop.f32.mrb[14].mxu0 }
 0x64c   :  { %v1680_v48 = vadd.f32 %v4234_v47, %v3925_v46  ;;  %v1674_v49 = vpop.f32.mrb[15].mxu0 }
 0x64d   :  { %v1675_v50 = vadd.f32 %v3925_v46, %v1674_v49 }
 0x64e   :  { %v1684_v51 = vadd.f32 %v1680_v48, %v4865_v7 }
 0x64f   :  { %v1683_v18 = vadd.f32 %v1675_v50, %v4861_v5  ;;  %v119_v5 = vld [vmem:[%s5431_s7] sm:$0xff] }
 0x650   :  { %v1688_v19 = vsel %vm141_vm0, %v1684_v51, 0.0  ;;  %v4424_v63 = vpack.c.bf16 %v120_v62, %v119_v5  ;;  %v3940_v5 = vld [vmem:[%s5425_s1 + $0x30] sm:$0xff]  ;;  %v3941_v62 = vld [vmem:[%s5425_s1 + $0x38] sm:$0xff] }
 0x651   :  { %1689 = vadd.xlane.f32.xlu1 %v1688_v19  ;;  %v1685_v52 = vsel %vm141_vm0, %v1683_v18, 0.0 }
 0x652   :  { %1686 = vadd.xlane.f32.xlu0 %v1685_v52  ;;  %4425 = vmatprep.subr.bf16.mxu1 %v4424_v63 }
 0x653   :  { %4427 = vmatpush3.bf16.msra.mxu1 %v4424_v63  ;;  %v4452_v63 = vpack.c.bf16 %v3941_v62, %v3940_v5 }
 0x654   :  { %4429 = vmatprep.subr.bf16.mxu1 %v4428_v2 }
 0x657   :  { %4431 = vmatpush3.bf16.msra.mxu1 %v4428_v2 }
 0x6de   :  { %v1690_v53 = vpop.xlane.xlu1 %1689 }
 0x6df   :  { %v1693_v54 = vmul.f32 0.03125, %v1690_v53  ;;  %v1687_v55 = vpop.xlane.xlu0 %1686 }
 0x6e0   :  { %v1692_v56 = vmul.f32 0.03125, %v1687_v55 }
 0x6e1   :  { %v1695_v57 = vsub.f32 %v1684_v51, %v1693_v54 }
 0x6e2   :  { %v1694_v58 = vsub.f32 %v1683_v18, %v1692_v56 }
 0x6e3   :  { %v1697_v61 = vmul.f32 %v1695_v57, %v1695_v57 }
 0x6e4   :  { %v1696_v59 = vmul.f32 %v1694_v58, %v1694_v58 }
 0x6e5   :  { %v1701_v7 = vsel %vm141_vm0, %v1697_v61, 0.0  ;;  %v3939_v61 = vld [vmem:[%s5425_s1 + $0x28] sm:$0xff] }
 0x6e6   :  { %v1698_v60 = vsel %vm141_vm0, %v1696_v59, 0.0 }
 0x6e7   :  { %1699 = vadd.xlane.f32.xlu0 %v1698_v60  ;;  %v3938_v60 = vld [vmem:[%s5425_s1 + $0x20] sm:$0xff] }
 0x6eb   :  { %1702 = vadd.xlane.f32.xlu0 %v1701_v7  ;;  %v4448_v7 = vpack.c.bf16 %v3939_v61, %v3938_v60 }
 0x6ed   :  { %4449 = vmatprep.subr.bf16.mxu1 %v4448_v7 }
 0x774   :  { %v1700_v15 = vpop.xlane.xlu0 %1699 }
 0x775   :  { %v1704_v16 = vmul.f32 0.03125, %v1700_v15 }
 0x777   :  { %v1706_v17 = vadd.f32 1e-05, %v1704_v16 }
 0x778   :  { %v1703_v20 = vpop.xlane.xlu0 %1702 }
 0x779   :  { %4544 = vrsqrt.f32 %v1706_v17  ;;  %v1705_v21 = vmul.f32 0.03125, %v1703_v20 }
 0x77b   :  { %v1707_v22 = vadd.f32 1e-05, %v1705_v21  ;;  %v3964_v21 = vld [vmem:[%s5426_s2 + $0x1] ss:$0 sm:$0xff] }
 0x77d   :  { %4546 = vrsqrt.f32 %v1707_v22 }
 0x783   :  { %v4545_v23 = vpop.eup %4544 }
 0x784   :  { %v1710_v25 = vmul.f32 %v4545_v23, %v1694_v58 }
 0x786   :  { %v1718_v27 = vmul.f32 %v3928_v24, %v1710_v25 }
 0x787   :  { %v4547_v28 = vpop.eup %4546 }
 0x788   :  { %v1711_v29 = vmul.f32 %v4547_v28, %v1695_v57  ;;  %v1726_v30 = vadd.f32 %v3929_v26, %v1718_v27 }
 0x78a   :  { %v1719_v31 = vmul.f32 %v3928_v24, %v1711_v29  ;;  %4243 = vmatprep.mubr.msk.f32.mxu1 %vm141_vm0, %v1726_v30 }
 0x78c   :  { %v1727_v32 = vadd.f32 %v3929_v26, %v1719_v31 }
 0x78e   :  { %4244 = vmatmul.mubr.msk.f32.vlgmr.msra.gmra.mrb[20].mxu1 %vm141_vm0, %v1727_v32 }
 0x78f   :  { %4451 = vmatpush3.bf16.msra.mxu1 %v4448_v7 }
 0x790   :  { %4453 = vmatprep.subr.bf16.mxu1 %v4452_v63 }
 0x793   :  { %4455 = vmatpush3.bf16.msra.mxu1 %v4452_v63 }
 0x794   :  { %4276 = vmatprep.subr.mxu1 %v4694_v10 }
 0x861   :  { %v4245_v37 = vpop.f32.mrb[20].mxu1 }
 0x862   :  { %v1812_v38 = vadd.f32 %v4245_v37, %v3930_v36  ;;  %v1806_v39 = vpop.f32.mrb[21].mxu1 }
 0x863   :  { %v1807_v40 = vadd.f32 %v3930_v36, %v1806_v39 }
 0x864   :  { %v1816_v42 = vmax.f32 %v1812_v38, 0.0 }
 0x865   :  { %v1815_v41 = vmax.f32 %v1807_v40, 0.0 }
 0x867   :  { %4262 = vmatprep.mubr.msk.f32.mxu0 %vm1823_vm5, %v1815_v41 }
 0x868   :  { %4263 = vmatmul.mubr.msk.f32.vlgmr.msra.gmra.mrb[16].mxu0 %vm1823_vm5, %v1816_v42 }
 0x869   :  { %4288 = vmatprep.mubr.msk.f32.mxu0 %vm4697_vm1, %v4694_v10 }
 0x93b   :  { %v4264_v44 = vpop.f32.mrb[16].mxu0 }
 0x93c   :  { %v1902_v45 = vadd.f32 %v4264_v44, %v3933_v43  ;;  %v1896_v46 = vpop.f32.mrb[17].mxu0 }
 0x93d   :  { %v1897_v47 = vadd.f32 %v3933_v43, %v1896_v46 }
 0x93e   :  { %v1906_v48 = vadd.f32 %v1902_v45, %v1727_v32 }
 0x93f   :  { %v1905_v49 = vadd.f32 %v1897_v47, %v1726_v30 }
 0x940   :  { %v1910_v50 = vsel %vm141_vm0, %v1906_v48, 0.0 }
 0x941   :  { %1911 = vadd.xlane.f32.xlu0 %v1910_v50  ;;  %v1907_v51 = vsel %vm141_vm0, %v1905_v49, 0.0 }
 0x942   :  { %1908 = vadd.xlane.f32.xlu1 %v1907_v51 }
 0x9ce   :  { %v1912_v18 = vpop.xlane.xlu0 %1911 }
 0x9cf   :  { %v1914_v19 = vmul.f32 0.03125, %v1912_v18  ;;  %v1909_v52 = vpop.xlane.xlu1 %1908 }
 0x9d0   :  { %v1913_v53 = vmul.f32 0.03125, %v1909_v52 }
 0x9d1   :  { %v1916_v54 = vsub.f32 %v1906_v48, %v1914_v19 }
 0x9d2   :  { %v1915_v55 = vsub.f32 %v1905_v49, %v1913_v53 }
 0x9d3   :  { %v1918_v56 = vmul.f32 %v1916_v54, %v1916_v54 }
 0x9d4   :  { %v1917_v57 = vmul.f32 %v1915_v55, %v1915_v55 }
 0x9d5   :  { %v1922_v58 = vsel %vm141_vm0, %v1918_v56, 0.0 }
 0x9d6   :  { %1923 = vadd.xlane.f32.xlu0 %v1922_v58  ;;  %v1919_v59 = vsel %vm141_vm0, %v1917_v57, 0.0 }
 0x9d7   :  { %1920 = vadd.xlane.f32.xlu1 %v1919_v59 }
 0xa63   :  { %v1924_v0 = vpop.xlane.xlu0 %1923 }
 0xa64   :  { %v1926_v1 = vmul.f32 0.03125, %v1924_v0  ;;  %v1921_v2 = vpop.xlane.xlu1 %1920 }
 0xa65   :  { %v1925_v3 = vmul.f32 0.03125, %v1921_v2 }
 0xa66   :  { %v1928_v4 = vadd.f32 1e-05, %v1926_v1 }
 0xa67   :  { %v1927_v6 = vadd.f32 1e-05, %v1925_v3 }
 0xa68   :  { %4548 = vrsqrt.f32 %v1928_v4 }
 0xa69   :  { %4550 = vrsqrt.f32 %v1927_v6 }
 0xa72   :  { %v4549_v8 = vpop.eup %4548 }
 0xa73   :  { %v4551_v11 = vpop.eup %4550  ;;  %v1932_v12 = vmul.f32 %v4549_v8, %v1916_v54 }
 0xa74   :  { %v1931_v13 = vmul.f32 %v4551_v11, %v1915_v55 }
 0xa75   :  { %v1940_v15 = vmul.f32 %v3936_v9, %v1932_v12 }
 0xa76   :  { %v1939_v16 = vmul.f32 %v3936_v9, %v1931_v13 }
 0xa77   :  { %v5149_v20 = vadd.f32 %v3937_v14, %v1940_v15 }
 0xa78   :  { %v5147_v17 = vadd.f32 %v3937_v14, %v1939_v16 }
 0xa7a   :  { %4273 = vmatprep.mubr.msk.f32.mxu1 %vm141_vm0, %v5147_v17 }
 0xa7b   :  { %4274 = vmatmul.mubr.msk.f32.vlgmr.msra.gmra.mrb[22].mxu1 %vm141_vm0, %v5149_v20 }
 0xa7c   :  { %4278 = vmatprep.mubr.msk.f32.mxu1 %vm4697_vm1, %v4694_v10 }
 0xb4e   :  { %v4275_v22 = vpop.f32.mrb[22].mxu1 }
 0xb4f   :  { %v5160_v23 = vadd.f32 %v4275_v22, %v3964_v21  ;;  %v2067_v24 = vpop.f32.mrb[23].mxu1 }
 0xb50   :  { %v5162_v25 = vadd.f32 %v3964_v21, %v2067_v24 }
 0xb51   :  { %2080 = vrot.lane.b32.xlu0 %v5160_v23, %s4696_s24  ;;  %v2097_v35 = vmul.f32 0.35355338, %v5160_v23 }
 0xb52   :  { %2078 = vrot.lane.b32.xlu1 %v5162_v25, %s4696_s24  ;;  %v2096_v32 = vmul.f32 0.35355338, %v5162_v25 }
 0xb55   :  { %2090 = vrot.lane.b32.xlu0 %v5162_v25, %s4698_s25 }
 0xb56   :  { %2084 = vrot.lane.b32.xlu1 %v5162_v25, %s4695_s29 }
 0xb59   :  { %2104 = vrot.lane.b32.xlu0 %v5162_v25, %s4699_s26 }
 0xb5a   :  { %2086 = vrot.lane.b32.xlu1 %v5160_v23, %s4695_s29 }
 0xb5e   :  { %2092 = vrot.lane.b32.xlu1 %v5160_v23, %s4698_s25 }
 0xb62   :  { %2181 = vrot.lane.b32.xlu1 %v5160_v23, %s4699_s26 }
 0xbc3   :  { %v5180_v26 = vpop.permute.xlu0 %2080 }
 0xbc4   :  { %2335 = vrot.lane.b32.xlu1 %v5180_v26, %s4699_s26  ;;  %v5184_v27 = vpop.permute.xlu1 %2078  ;;  %v2099_v38 = vmul.f32 0.35355338, %v5180_v26 }
 0xbc5   :  { %2258 = vrot.lane.b32.xlu0 %v5184_v27, %s4699_s26  ;;  %v2098_v39 = vmul.f32 0.35355338, %v5184_v27 }
 0xbc7   :  { %v5188_v28 = vpop.permute.xlu0 %2090 }
 0xbc8   :  { %v5190_v29 = vpop.permute.xlu1 %2084  ;;  %v2102_v44 = vmul.f32 0.35355338, %v5188_v28 }
 0xbc9   :  { %2412 = vrot.lane.b32.xlu0 %v5190_v29, %s4699_s26  ;;  %v2100_v41 = vmul.f32 0.35355338, %v5190_v29 }
 0xbcb   :  { %v2105_v30 = vpop.permute.xlu0 %2104 }
 0xbcc   :  { %4277 = vmatpush3.xpose.msk.msra.mxu1 %vm253_vm2, %v2105_v30  ;;  %v5195_v31 = vpop.permute.xlu1 %2086 }
 0xbcd   :  { %2566 = vrot.lane.b32.xlu0 %v5188_v28, %s4699_s26  ;;  %2489 = vrot.lane.b32.xlu1 %v5195_v31, %s4699_s26  ;;  %v2101_v45 = vmul.f32 0.35355338, %v5195_v31 }
 0xbce   :  { %4281 = vmatprep.subr.mxu1 %v4694_v10 }
 0xbcf   :  { %4279 = vmatmul.mubr.msk.f32.vlgmr.msra.gmra.mrb[24].mxu1 %vm253_vm2, %v2096_v32 }
 0xbd0   :  { %v5204_v33 = vpop.permute.xlu1 %2092  ;;  %4283 = vmatprep.mubr.msk.f32.mxu1 %vm4697_vm1, %v4694_v10 }
 0xbd1   :  { %2643 = vrot.lane.b32.xlu1 %v5204_v33, %s4699_s26  ;;  %v2103_v47 = vmul.f32 0.35355338, %v5204_v33 }
 0xbd4   :  { %v2182_v34 = vpop.permute.xlu1 %2181 }
 0xbd5   :  { %4282 = vmatpush3.xpose.msk.msra.mxu1 %vm253_vm2, %v2182_v34 }
 0xbd6   :  { %4291 = vmatprep.subr.mxu1 %v4694_v10 }
 0xbd8   :  { %4284 = vmatmul.mubr.msk.f32.vlgmr.msra.gmra.mrb[26].mxu1 %vm253_vm2, %v2097_v35 }
 0xbd9   :  { %4293 = vmatprep.mubr.msk.f32.mxu1 %vm4697_vm1, %v4694_v10 }
 0xc36   :  { %v2336_v36 = vpop.permute.xlu1 %2335 }
 0xc37   :  { %v2259_v37 = vpop.permute.xlu0 %2258  ;;  %4292 = vmatpush3.xpose.msk.msra.mxu1 %vm253_vm2, %v2336_v36 }
 0xc38   :  { %4287 = vmatpush3.xpose.msk.msra.mxu0 %vm253_vm2, %v2259_v37  ;;  %4301 = vmatprep.subr.mxu1 %v4694_v10 }
 0xc39   :  { %4296 = vmatprep.subr.mxu0 %v4694_v10 }
 0xc3a   :  { %4294 = vmatmul.mubr.msk.f32.vlgmr.msra.gmra.mrb[28].mxu1 %vm253_vm2, %v2099_v38 }
 0xc3b   :  { %4289 = vmatmul.mubr.msk.f32.vlgmr.msra.gmra.mrb[18].mxu0 %vm253_vm2, %v2098_v39  ;;  %v2413_v40 = vpop.permute.xlu0 %2412  ;;  %4303 = vmatprep.mubr.msk.f32.mxu1 %vm4697_vm1, %v4694_v10 }
 0xc3c   :  { %4297 = vmatpush3.xpose.msk.msra.mxu0 %vm253_vm2, %v2413_v40  ;;  %4298 = vmatprep.mubr.msk.f32.mxu0 %vm4697_vm1, %v4694_v10 }
 0xc3d   :  { %4306 = vmatprep.subr.mxu0 %v4694_v10 }
 0xc3f   :  { %4299 = vmatmul.mubr.msk.f32.vlgmr.msra.gmra.mrb[20].mxu0 %vm253_vm2, %v2100_v41  ;;  %v2567_v42 = vpop.permute.xlu0 %2566  ;;  %v2490_v43 = vpop.permute.xlu1 %2489 }
 0xc40   :  { %4302 = vmatpush3.xpose.msk.msra.mxu1 %vm253_vm2, %v2490_v43  ;;  %4307 = vmatpush3.xpose.msk.msra.mxu0 %vm253_vm2, %v2567_v42 }
 0xc41   :  { %4308 = vmatprep.mubr.msk.f32.mxu0 %vm4697_vm1, %v4694_v10  ;;  %4311 = vmatprep.subr.mxu1 %v4694_v10 }
 0xc42   :  { %4316 = vmatprep.subr.mxu0 %v4694_v10 }
 0xc43   :  { %4309 = vmatmul.mubr.msk.f32.vlgmr.msra.gmra.mrb[22].mxu0 %vm253_vm2, %v2102_v44  ;;  %v2644_v46 = vpop.permute.xlu1 %2643  ;;  %4304 = vmatmul.mubr.msk.f32.vlgmr.msra.gmra.mrb[30].mxu1 %vm253_vm2, %v2101_v45 }
 0xc44   :  { %4312 = vmatpush3.xpose.msk.msra.mxu1 %vm253_vm2, %v2644_v46  ;;  %4313 = vmatprep.mubr.msk.f32.mxu1 %vm4697_vm1, %v4694_v10 }
 0xc45   :  { %4321 = vmatprep.subr.mxu1 %v4694_v10  ;;  %4318 = vmatprep.mubr.msk.f32.mxu0 %vm4697_vm1, %v4694_v10 }
 0xc47   :  { %4314 = vmatmul.mubr.msk.f32.vlgmr.msra.gmra.mrb[32].mxu1 %vm253_vm2, %v2103_v47 }
 0xc48   :  { %4323 = vmatprep.mubr.msk.f32.mxu1 %vm4697_vm1, %v4694_v10 }
 0xca2   :  { %v2177_v48 = vpop.f32.mrb[24].mxu1 }
 0xca3   :  { %v4280_v49 = vpop.f32.mrb[25].mxu1  ;;  %v2720_v50 = vsel %vm253_vm2, %v2177_v48, -inf }
 0xca4   :  { %2721 = vmax.xlane.f32.xlu0 %v2720_v50 }
 0xcab   :  { %v2254_v51 = vpop.f32.mrb[26].mxu1 }
 0xcac   :  { %v4285_v18 = vpop.f32.mrb[27].mxu1  ;;  %v2723_v19 = vsel %vm253_vm2, %v2254_v51, -inf }
 0xcad   :  { %2724 = vmax.xlane.f32.xlu1 %v2723_v19 }
 0xd0d   :  { %v2408_v52 = vpop.f32.mrb[28].mxu1 }
 0xd0e   :  { %v2331_v53 = vpop.f32.mrb[18].mxu0  ;;  %v4295_v54 = vpop.f32.mrb[29].mxu1  ;;  %v2729_v60 = vsel %vm253_vm2, %v2408_v52, -inf }
 0xd0f   :  { %v4290_v55 = vpop.f32.mrb[19].mxu0  ;;  %v2726_v56 = vsel %vm253_vm2, %v2331_v53, -inf }
 0xd10   :  { %2727 = vmax.xlane.f32.xlu0 %v2726_v56 }
 0xd12   :  { %v2485_v57 = vpop.f32.mrb[20].mxu0 }
 0xd13   :  { %v4300_v58 = vpop.f32.mrb[21].mxu0  ;;  %v2732_v59 = vsel %vm253_vm2, %v2485_v57, -inf }
 0xd14   :  { %2733 = vmax.xlane.f32.xlu1 %v2732_v59  ;;  %2730 = vmax.xlane.f32.xlu0 %v2729_v60 }
 0xd16   :  { %v2562_v61 = vpop.f32.mrb[30].mxu1  ;;  %v2639_v7 = vpop.f32.mrb[22].mxu0 }
 0xd17   :  { %v4305_v5 = vpop.f32.mrb[31].mxu1  ;;  %v4310_v62 = vpop.f32.mrb[23].mxu0  ;;  %v2738_v63 = vsel %vm253_vm2, %v2639_v7, -inf  ;;  %v2735_v0 = vsel %vm253_vm2, %v2562_v61, -inf }
 0xd18   :  { %2739 = vmax.xlane.f32.xlu1 %v2738_v63  ;;  %2736 = vmax.xlane.f32.xlu0 %v2735_v0 }
 0xd1a   :  { %v2716_v1 = vpop.f32.mrb[32].mxu1 }
 0xd1b   :  { %v4315_v2 = vpop.f32.mrb[33].mxu1  ;;  %v2741_v3 = vsel %vm253_vm2, %v2716_v1, -inf }
 0xd1c   :  { %2742 = vmax.xlane.f32.xlu0 %v2741_v3 }
 0xd29   :  { %2808 = vrot.lane.b32.xlu1 %v5162_v25, %s4700_s27 }
 0xd2d   :  { %2960 = vrot.lane.b32.xlu1 %v5184_v27, %s4700_s27 }
 0xd31   :  { %3036 = vrot.lane.b32.xlu1 %v5180_v26, %s4700_s27  ;;  %v2722_v8 = vpop.xlane.xlu0 %2721 }
 0xd32   :  { %2884 = vrot.lane.b32.xlu0 %v5160_v23, %s4700_s27  ;;  %v2744_v9 = vsub.f32 %v2177_v48, %v2722_v8 }
 0xd34   :  { %v2752_v12 = vmul.f32 1.442695, %v2744_v9 }
 0xd35   :  { %3188 = vrot.lane.b32.xlu1 %v5195_v31, %s4700_s27 }
 0xd36   :  { %3112 = vrot.lane.b32.xlu0 %v5190_v29, %s4700_s27 }
 0xd3a   :  { %v2725_v4 = vpop.xlane.xlu1 %2724 }
 0xd3b   :  { %v2745_v6 = vsub.f32 %v2254_v51, %v2725_v4 }
 0xd3d   :  { %v2754_v11 = vmul.f32 1.442695, %v2745_v6 }
 0xd3f   :  { %4552 = vpow2.f32 %v2754_v11 }
 0xd40   :  { %4554 = vpow2.f32 %v2752_v12 }
 0xd49   :  { %v5272_v13 = vpop.eup %4552 }
 0xd4a   :  { %v2771_v14 = vsel %vm253_vm2, %v5272_v13, 0.0  ;;  %v5276_v15 = vpop.eup %4554 }
 0xd4b   :  { %v2768_v16 = vsel %vm253_vm2, %v5276_v15, 0.0 }
 0xd55   :  { %2772 = vadd.xlane.f32.xlu0 %v2771_v14 }
 0xd59   :  { %2769 = vadd.xlane.f32.xlu1 %v2768_v16 }
 0xd9d   :  { %v2728_v21 = vpop.xlane.xlu0 %2727 }
 0xd9e   :  { %v2746_v22 = vsub.f32 %v2331_v53, %v2728_v21 }
 0xda0   :  { %v2756_v23 = vmul.f32 1.442695, %v2746_v22 }
 0xda1   :  { %v2734_v24 = vpop.xlane.xlu1 %2733  ;;  %v2731_v25 = vpop.xlane.xlu0 %2730 }
 0xda2   :  { %4556 = vpow2.f32 %v2756_v23  ;;  %v2748_v26 = vsub.f32 %v2485_v57, %v2734_v24  ;;  %v2747_v27 = vsub.f32 %v2408_v52, %v2731_v25 }
 0xda4   :  { %v2760_v29 = vmul.f32 1.442695, %v2748_v26  ;;  %v2758_v30 = vmul.f32 1.442695, %v2747_v27  ;;  %v3943_v26 = vld [vmem:[%s5427_s3 + $0x20] sm:$0xff]  ;;  %v3944_v27 = vld [vmem:[%s5427_s3 + $0x28] sm:$0xff] }
 0xda5   :  { %v2740_v31 = vpop.xlane.xlu1 %2739  ;;  %v2737_v32 = vpop.xlane.xlu0 %2736 }
 0xda6   :  { %4558 = vpow2.f32 %v2760_v29  ;;  %v2750_v34 = vsub.f32 %v2639_v7, %v2740_v31  ;;  %v2749_v35 = vsub.f32 %v2562_v61, %v2737_v32  ;;  %v4456_v29 = vpack.c.bf16 %v3944_v27, %v3943_v26 }
 0xda7   :  { %4560 = vpow2.f32 %v2758_v30  ;;  %v3946_v30 = vld [vmem:[%s5427_s3 + $0x38] sm:$0xff] }
 0xda8   :  { %v2764_v36 = vmul.f32 1.442695, %v2750_v34  ;;  %v2762_v37 = vmul.f32 1.442695, %v2749_v35 }
 0xda9   :  { %v2809_v38 = vpop.permute.xlu1 %2808  ;;  %v2743_v39 = vpop.xlane.xlu0 %2742 }
 0xdaa   :  { %4562 = vpow2.f32 %v2764_v36  ;;  %v2751_v40 = vsub.f32 %v2716_v1, %v2743_v39  ;;  %4317 = vmatpush3.msra.mxu0 %v2809_v38 }
 0xdab   :  { %4564 = vpow2.f32 %v2762_v37  ;;  %4326 = vmatprep.subr.mxu0 %v4694_v10 }
 0xdac   :  { %v4557_v41 = vpop.eup %4556  ;;  %v2766_v42 = vmul.f32 1.442695, %v2751_v40 }
 0xdad   :  { %v2885_v43 = vpop.permute.xlu0 %2884  ;;  %v2774_v44 = vsel %vm253_vm2, %v4557_v41, 0.0  ;;  %v2961_v53 = vpop.permute.xlu1 %2960 }
 0xdae   :  { %4566 = vpow2.f32 %v2766_v42  ;;  %2775 = vadd.xlane.f32.xlu1 %v2774_v44  ;;  %4322 = vmatpush3.msra.mxu1 %v2885_v43 }
 0xdaf   :  { %4331 = vmatprep.subr.mxu1 %v4694_v10 }
 0xdb0   :  { %v4559_v45 = vpop.eup %4558 }
 0xdb1   :  { %v4561_v46 = vpop.eup %4560  ;;  %v2780_v47 = vsel %vm253_vm2, %v4559_v45, 0.0  ;;  %v3037_v54 = vpop.permute.xlu1 %3036 }
 0xdb2   :  { %2781 = vadd.xlane.f32.xlu1 %v2780_v47  ;;  %v2777_v48 = vsel %vm253_vm2, %v4561_v46, 0.0  ;;  %v3113_v55 = vpop.permute.xlu0 %3112 }
 0xdb3   :  { %2778 = vadd.xlane.f32.xlu0 %v2777_v48 }
 0xdb4   :  { %v4563_v49 = vpop.eup %4562 }
 0xdb5   :  { %v4565_v50 = vpop.eup %4564  ;;  %v2786_v51 = vsel %vm253_vm2, %v4563_v49, 0.0  ;;  %v3189_v56 = vpop.permute.xlu1 %3188 }
 0xdb6   :  { %2787 = vadd.xlane.f32.xlu1 %v2786_v51  ;;  %v2783_v18 = vsel %vm253_vm2, %v4565_v50, 0.0 }
 0xdb7   :  { %2784 = vadd.xlane.f32.xlu0 %v2783_v18 }
 0xdb8   :  { %v5287_v19 = vpop.eup %4566 }
 0xdb9   :  { %v2789_v52 = vsel %vm253_vm2, %v5287_v19, 0.0 }
 0xdbb   :  { %2790 = vadd.xlane.f32.xlu0 %v2789_v52 }
 0xdc7   :  { %3340 = vrot.lane.b32.xlu1 %v5204_v33, %s4700_s27 }
 0xdd1   :  { %3264 = vrot.lane.b32.xlu0 %v5188_v28, %s4700_s27 }
 0xde2   :  { %v2773_v57 = vpop.xlane.xlu0 %2772 }
 0xde3   :  { %4568 = vrcp.f32 %v2773_v57 }
 0xde6   :  { %v2770_v58 = vpop.xlane.xlu1 %2769 }
 0xde7   :  { %4570 = vrcp.f32 %v2770_v58 }
 0xded   :  { %v4569_v59 = vpop.eup %4568 }
 0xdee   :  { %v2795_v60 = vmul.f32 %v4569_v59, %v5272_v13 }
 0xdf0   :  { %4324 = vmatmul.mubr.msk.f32.vlgmr.msra.gmra.mrb[34].mxu1 %vm253_vm2, %v2795_v60 }
 0xdf1   :  { %v4571_v61 = vpop.eup %4570  ;;  %4332 = vmatpush3.msra.mxu1 %v3037_v54  ;;  %4333 = vmatprep.mubr.msk.f32.mxu1 %vm4697_vm1, %v4694_v10 }
 0xdf2   :  { %v2793_v28 = vmul.f32 %v4571_v61, %v5276_v15  ;;  %4341 = vmatprep.subr.mxu1 %v4694_v10 }
 0xdf4   :  { %4319 = vmatmul.mubr.msk.f32.vlgmr.msra.gmra.mrb[24].mxu0 %vm253_vm2, %v2793_v28 }
 0xdf5   :  { %4327 = vmatpush3.msra.mxu0 %v2961_v53  ;;  %4328 = vmatprep.mubr.msk.f32.mxu0 %vm4697_vm1, %v4694_v10 }
 0xdf6   :  { %4336 = vmatprep.subr.mxu0 %v4694_v10 }
 0xe3b   :  { %v2776_v33 = vpop.xlane.xlu1 %2775 }
 0xe3c   :  { %4572 = vrcp.f32 %v2776_v33 }
 0xe3f   :  { %v2782_v7 = vpop.xlane.xlu1 %2781 }
 0xe40   :  { %4574 = vrcp.f32 %v2782_v7  ;;  %v2779_v5 = vpop.xlane.xlu0 %2778 }
 0xe41   :  { %4576 = vrcp.f32 %v2779_v5 }
 0xe43   :  { %v2788_v62 = vpop.xlane.xlu1 %2787 }
 0xe44   :  { %4578 = vrcp.f32 %v2788_v62  ;;  %v2785_v63 = vpop.xlane.xlu0 %2784 }
 0xe45   :  { %4580 = vrcp.f32 %v2785_v63 }
 0xe46   :  { %v4573_v0 = vpop.eup %4572 }
 0xe47   :  { %v2797_v1 = vmul.f32 %v4573_v0, %v4557_v41  ;;  %v3341_v15 = vpop.permute.xlu1 %3340 }
 0xe48   :  { %v2791_v2 = vpop.xlane.xlu0 %2790 }
 0xe49   :  { %4582 = vrcp.f32 %v2791_v2  ;;  %4329 = vmatmul.mubr.msk.f32.vlgmr.msra.gmra.mrb[26].mxu0 %vm253_vm2, %v2797_v1 }
 0xe4a   :  { %v4575_v3 = vpop.eup %4574  ;;  %4337 = vmatpush3.msra.mxu0 %v3113_v55  ;;  %4338 = vmatprep.mubr.msk.f32.mxu0 %vm4697_vm1, %v4694_v10  ;;  %v3991_v55 = vld [vmem:[%s5428_s4 + $0x1] ss:$0 sm:$0xff] }
 0xe4b   :  { %v4577_v4 = vpop.eup %4576  ;;  %v2801_v6 = vmul.f32 %v4575_v3, %v4559_v45  ;;  %4346 = vmatprep.subr.mxu0 %v4694_v10 }
 0xe4c   :  { %v2799_v8 = vmul.f32 %v4577_v4, %v4561_v46  ;;  %v3265_v9 = vpop.permute.xlu0 %3264 }
 0xe4d   :  { %4339 = vmatmul.mubr.msk.f32.vlgmr.msra.gmra.mrb[28].mxu0 %vm253_vm2, %v2801_v6  ;;  %v3951_v6 = vld [vmem:[%s5431_s7 + $0x28] sm:$0xff] }
 0xe4e   :  { %v4579_v11 = vpop.eup %4578  ;;  %4334 = vmatmul.mubr.msk.f32.vlgmr.msra.gmra.mrb[36].mxu1 %vm253_vm2, %v2799_v8  ;;  %4347 = vmatpush3.msra.mxu0 %v3265_v9  ;;  %v3952_v9 = vld [vmem:[%s5431_s7 + $0x30] sm:$0xff] }
 0xe4f   :  { %v4581_v12 = vpop.eup %4580  ;;  %v2805_v13 = vmul.f32 %v4579_v11, %v4563_v49  ;;  %4342 = vmatpush3.msra.mxu1 %v3189_v56  ;;  %4343 = vmatprep.mubr.msk.f32.mxu1 %vm4697_vm1, %v4694_v10  ;;  %v3953_v11 = vld [vmem:[%s5431_s7 + $0x38] sm:$0xff] }
 0xe50   :  { %v2803_v14 = vmul.f32 %v4581_v12, %v4565_v50  ;;  %4348 = vmatprep.mubr.msk.f32.mxu0 %vm4697_vm1, %v4694_v10  ;;  %4351 = vmatprep.subr.mxu1 %v4694_v10  ;;  %v4468_v12 = vpack.c.bf16 %v3953_v11, %v3952_v9 }
 0xe51   :  { %4349 = vmatmul.mubr.msk.f32.vlgmr.msra.gmra.mrb[30].mxu0 %vm253_vm2, %v2805_v13  ;;  %4457 = vmatprep.subr.bf16.mxu0 %v4456_v29  ;;  %v3954_v13 = vld [vmem:[%s5433_s9 + $0x40] sm:$0xff] }
 0xe52   :  { %4344 = vmatmul.mubr.msk.f32.vlgmr.msra.gmra.mrb[38].mxu1 %vm253_vm2, %v2803_v14  ;;  %4459 = vmatpush3.bf16.msra.mxu0 %v4456_v29  ;;  %v3955_v14 = vld [vmem:[%s5433_s9 + $0x48] sm:$0xff] }
 0xe53   :  { %v4583_v16 = vpop.eup %4582  ;;  %4352 = vmatpush3.msra.mxu1 %v3341_v15  ;;  %4353 = vmatprep.mubr.msk.f32.mxu1 %vm4697_vm1, %v4694_v10  ;;  %v3945_v10 = vld [vmem:[%s5427_s3 + $0x30] sm:$0xff] }
 0xe54   :  { %v2807_v21 = vmul.f32 %v4583_v16, %v5287_v19  ;;  %v4460_v31 = vpack.c.bf16 %v3946_v30, %v3945_v10  ;;  %v3956_v15 = vld [vmem:[%s5433_s9 + $0x50] sm:$0xff]  ;;  %v4472_v16 = vpack.c.bf16 %v3955_v14, %v3954_v13 }
 0xe56   :  { %4354 = vmatmul.mubr.msk.f32.vlgmr.msra.gmra.mrb[40].mxu1 %vm253_vm2, %v2807_v21  ;;  %4461 = vmatprep.subr.bf16.mxu0 %v4460_v31  ;;  %v3957_v21 = vld [vmem:[%s5433_s9 + $0x58] sm:$0xff] }
 0xe57   :  { %4463 = vmatpush3.bf16.msra.mxu0 %v4460_v31 }
 0xe58   :  { %4473 = vmatprep.subr.bf16.mxu0 %v4472_v16 }
 0xec3   :  { %v2956_v22 = vpop.f32.mrb[34].mxu1 }
 0xec4   :  { %v4325_v23 = vpop.f32.mrb[35].mxu1 }
 0xec5   :  { %v3958_v23 = vld [vmem:[%s5433_s9 + $0x60] sm:$0xff] }
 0xec7   :  { %v2880_v24 = vpop.f32.mrb[24].mxu0 }
 0xec8   :  { %v4320_v25 = vpop.f32.mrb[25].mxu0 }
 0xf1c   :  { %v3032_v32 = vpop.f32.mrb[26].mxu0 }
 0xf1d   :  { %v4330_v34 = vpop.f32.mrb[27].mxu0  ;;  %3418 = vrot.lane.b32.xlu0 %v3032_v32, %s4691_s19 }
 0xf1e   :  { %v3994_v34 = vld [vmem:[%s5429_s5 + $0x1] ss:$0 sm:$0xff] }
 0xf20   :  { %v3184_v35 = vpop.f32.mrb[28].mxu0 }
 0xf21   :  { %v3108_v36 = vpop.f32.mrb[36].mxu1  ;;  %3426 = vrot.lane.b32.xlu0 %v3184_v35, %s5444_s30  ;;  %v4340_v37 = vpop.f32.mrb[29].mxu0 }
 0xf22   :  { %3420 = vrot.lane.b32.xlu1 %v3108_v36, %s4691_s19  ;;  %v4335_v38 = vpop.f32.mrb[37].mxu1  ;;  %v3995_v36 = vld [vmem:[%s5430_s6 + $0x1] ss:$0 sm:$0xff] }
 0xf24   :  { %v3336_v39 = vpop.f32.mrb[30].mxu0 }
 0xf25   :  { %v3260_v40 = vpop.f32.mrb[38].mxu1  ;;  %3434 = vrot.lane.b32.xlu0 %v3336_v39, %s4701_s13  ;;  %v4350_v41 = vpop.f32.mrb[31].mxu0 }
 0xf26   :  { %3428 = vrot.lane.b32.xlu1 %v3260_v40, %s5444_s30  ;;  %v4345_v42 = vpop.f32.mrb[39].mxu1 }
 0xf29   :  { %v3412_v43 = vpop.f32.mrb[40].mxu1 }
 0xf2a   :  { %3436 = vrot.lane.b32.xlu1 %v3412_v43, %s4701_s13  ;;  %v4355_v44 = vpop.f32.mrb[41].mxu1  ;;  %v3960_v43 = vld [vmem:[%s5433_s9 + $0x70] sm:$0xff] }
 0xf2b   :  { %v3961_v44 = vld [vmem:[%s5433_s9 + $0x78] sm:$0xff] }
 0xf8f   :  { %v3419_v45 = vpop.permute.xlu0 %3418 }
 0xf90   :  { %v3440_v48 = vsel %vm253_vm2, %v2880_v24, %v3419_v45  ;;  %v3959_v24 = vld [vmem:[%s5433_s9 + $0x68] sm:$0xff]  ;;  %v4484_v45 = vpack.c.bf16 %v3961_v44, %v3960_v43 }
 0xf91   :  { %v4480_v25 = vpack.c.bf16 %v3959_v24, %v3958_v23  ;;  %v4003_v24 = vld [vmem:[%s5436_s12 + $0x1] ss:$0 sm:$0xff] }
 0xf93   :  { %v3427_v46 = vpop.permute.xlu0 %3426 }
 0xf94   :  { %v3421_v47 = vpop.permute.xlu1 %3420  ;;  %v3442_v49 = vsel %vm1590_vm3, %v3440_v48, %v3427_v46  ;;  %v3996_v46 = vld [vmem:[#allocation4 + $0x1] ss:$0 sm:$0xff] }
 0xf95   :  { %v3441_v19 = vsel %vm253_vm2, %v2956_v22, %v3421_v47  ;;  %v4476_v22 = vpack.c.bf16 %v3957_v21, %v3956_v15 }
 0xf97   :  { %v3435_v50 = vpop.permute.xlu0 %3434 }
 0xf98   :  { %v3444_v51 = vsel %vm1593_vm4, %v3442_v49, %v3435_v50  ;;  %v3429_v18 = vpop.permute.xlu1 %3428 }
 0xf99   :  { %4364 = vmatprep.mubr.msk.f32.mxu0 %vm141_vm0, %v3444_v51  ;;  %v3443_v52 = vsel %vm1590_vm3, %v3441_v19, %v3429_v18  ;;  %v3999_v19 = vld [vmem:[#allocation6 + $0x1] ss:$0 sm:$0xff] }
 0xf9c   :  { %v3437_v53 = vpop.permute.xlu1 %3436 }
 0xf9d   :  { %v3445_v54 = vsel %vm1593_vm4, %v3443_v52, %v3437_v53 }
 0xf9e   :  { %4365 = vmatmul.mubr.msk.f32.vlgmr.msra.gmra.mrb[32].mxu0 %vm141_vm0, %v3445_v54 }
 0xf9f   :  { %4475 = vmatpush3.bf16.msra.mxu0 %v4472_v16  ;;  %v4002_v16 = vld [vmem:[%s5435_s11 + $0x1] ss:$0 sm:$0xff] }
 0xfa0   :  { %4477 = vmatprep.subr.bf16.mxu0 %v4476_v22 }
 0xfa3   :  { %4479 = vmatpush3.bf16.msra.mxu0 %v4476_v22 }
 0xfa4   :  { %4481 = vmatprep.subr.bf16.mxu0 %v4480_v25 }
 0xfa7   :  { %4483 = vmatpush3.bf16.msra.mxu0 %v4480_v25 }
 0xfa8   :  { %4485 = vmatprep.subr.bf16.mxu0 %v4484_v45 }
 0xfab   :  { %4487 = vmatpush3.bf16.msra.mxu0 %v4484_v45 }
0x1071   :  { %v4366_v56 = vpop.f32.mrb[32].mxu0 }
0x1072   :  { %v3530_v57 = vadd.f32 %v4366_v56, %v3991_v55  ;;  %v3524_v58 = vpop.f32.mrb[33].mxu0 }
0x1073   :  { %v3525_v59 = vadd.f32 %v3991_v55, %v3524_v58 }
0x1074   :  { %v3534_v60 = vadd.f32 %v3530_v57, %v5149_v20 }
0x1075   :  { %v3533_v61 = vadd.f32 %v3525_v59, %v5147_v17  ;;  %v3950_v17 = vld [vmem:[%s5431_s7 + $0x20] sm:$0xff] }
0x1076   :  { %v3538_v28 = vsel %vm141_vm0, %v3534_v60, 0.0  ;;  %v4464_v8 = vpack.c.bf16 %v3951_v6, %v3950_v17  ;;  %v3800_v17 = vld [vmem:[#allocation7 + $0x18] sm:$0xff] }
0x1077   :  { %3539 = vadd.xlane.f32.xlu1 %v3538_v28  ;;  %v3535_v33 = vsel %vm141_vm0, %v3533_v61, 0.0 }
0x1078   :  { %3536 = vadd.xlane.f32.xlu0 %v3535_v33  ;;  %4465 = vmatprep.subr.bf16.mxu1 %v4464_v8 }
0x1079   :  { %4467 = vmatpush3.bf16.msra.mxu1 %v4464_v8 }
0x107a   :  { %4469 = vmatprep.subr.bf16.mxu1 %v4468_v12 }
0x107d   :  { %4471 = vmatpush3.bf16.msra.mxu1 %v4468_v12 }
0x1104   :  { %v3540_v7 = vpop.xlane.xlu1 %3539 }
0x1105   :  { %v3542_v5 = vmul.f32 0.03125, %v3540_v7  ;;  %v3537_v62 = vpop.xlane.xlu0 %3536 }
0x1106   :  { %v3541_v63 = vmul.f32 0.03125, %v3537_v62 }
0x1107   :  { %v3544_v0 = vsub.f32 %v3534_v60, %v3542_v5 }
0x1108   :  { %v3543_v1 = vsub.f32 %v3533_v61, %v3541_v63 }
0x1109   :  { %v3546_v4 = vmul.f32 %v3544_v0, %v3544_v0 }
0x110a   :  { %v3545_v2 = vmul.f32 %v3543_v1, %v3543_v1 }
0x110b   :  { %v3550_v20 = vsel %vm141_vm0, %v3546_v4, 0.0 }
0x110c   :  { %v3547_v3 = vsel %vm141_vm0, %v3545_v2, 0.0  ;;  %v3797_v2 = vld [vmem:[#allocation7] sm:$0xff] }
0x110d   :  { %3548 = vadd.xlane.f32.xlu0 %v3547_v3  ;;  %v3798_v3 = vld [vmem:[#allocation7 + $0x8] sm:$0xff] }
0x110e   :  { %v4488_v4 = vpack.c.bf16 %v3798_v3, %v3797_v2 }
0x1110   :  { %4489 = vmatprep.subr.bf16.mxu1 %v4488_v4 }
0x1111   :  { %3551 = vadd.xlane.f32.xlu0 %v3550_v20  ;;  %v3799_v20 = vld [vmem:[#allocation7 + $0x10] sm:$0xff] }
0x1112   :  { %v4492_v6 = vpack.c.bf16 %v3800_v17, %v3799_v20 }
0x119a   :  { %v3549_v26 = vpop.xlane.xlu0 %3548 }
0x119b   :  { %v3553_v27 = vmul.f32 0.03125, %v3549_v26 }
0x119d   :  { %v3555_v29 = vadd.f32 1e-05, %v3553_v27 }
0x119e   :  { %v3552_v10 = vpop.xlane.xlu0 %3551 }
0x119f   :  { %4584 = vrsqrt.f32 %v3555_v29  ;;  %v3554_v30 = vmul.f32 0.03125, %v3552_v10  ;;  %v4004_v10 = vld [vmem:[%s5438_s14] ss:$0 sm:$0xff] }
0x11a1   :  { %v3556_v31 = vadd.f32 1e-05, %v3554_v30 }
0x11a3   :  { %4586 = vrsqrt.f32 %v3556_v31 }
0x11a9   :  { %v4585_v32 = vpop.eup %4584 }
0x11aa   :  { %v3559_v35 = vmul.f32 %v4585_v32, %v3543_v1 }
0x11ac   :  { %v3567_v37 = vmul.f32 %v3994_v34, %v3559_v35 }
0x11ad   :  { %v4587_v38 = vpop.eup %4586 }
0x11ae   :  { %v3560_v39 = vmul.f32 %v4587_v38, %v3544_v0  ;;  %v3575_v40 = vadd.f32 %v3995_v36, %v3567_v37 }
0x11b0   :  { %v3568_v41 = vmul.f32 %v3994_v34, %v3560_v39  ;;  %4375 = vmatprep.mubr.msk.f32.mxu1 %vm141_vm0, %v3575_v40 }
0x11b2   :  { %v3576_v42 = vadd.f32 %v3995_v36, %v3568_v41 }
0x11b4   :  { %4376 = vmatmul.mubr.msk.f32.vlgmr.msra.gmra.mrb[42].mxu1 %vm141_vm0, %v3576_v42 }
0x11b5   :  { %4491 = vmatpush3.bf16.msra.mxu1 %v4488_v4 }
0x11b6   :  { %4493 = vmatprep.subr.bf16.mxu1 %v4492_v6 }
0x11b9   :  { %4495 = vmatpush3.bf16.msra.mxu1 %v4492_v6 }
0x1287   :  { %v4377_v47 = vpop.f32.mrb[42].mxu1 }
0x1288   :  { %v3661_v48 = vadd.f32 %v4377_v47, %v3996_v46  ;;  %v3655_v49 = vpop.f32.mrb[43].mxu1 }
0x1289   :  { %v3656_v50 = vadd.f32 %v3996_v46, %v3655_v49 }
0x128a   :  { %v3665_v18 = vmax.f32 %v3661_v48, 0.0 }
0x128b   :  { %v3664_v51 = vmax.f32 %v3656_v50, 0.0 }
0x128d   :  { %4394 = vmatprep.mubr.msk.f32.mxu0 %vm1823_vm5, %v3664_v51 }
0x128e   :  { %4395 = vmatmul.mubr.msk.f32.vlgmr.msra.gmra.mrb[34].mxu0 %vm1823_vm5, %v3665_v18 }
0x1361   :  { %v4396_v52 = vpop.f32.mrb[34].mxu0 }
0x1362   :  { %v3750_v53 = vadd.f32 %v4396_v52, %v3999_v19  ;;  %v3744_v54 = vpop.f32.mrb[35].mxu0 }
0x1363   :  { %v3745_v55 = vadd.f32 %v3999_v19, %v3744_v54 }
0x1364   :  { %v3754_v56 = vadd.f32 %v3750_v53, %v3576_v42 }
0x1365   :  { %v3753_v57 = vadd.f32 %v3745_v55, %v3575_v40 }
0x1366   :  { %v3758_v58 = vsel %vm141_vm0, %v3754_v56, 0.0 }
0x1367   :  { %3759 = vadd.xlane.f32.xlu0 %v3758_v58  ;;  %v3755_v59 = vsel %vm141_vm0, %v3753_v57, 0.0 }
0x1368   :  { %3756 = vadd.xlane.f32.xlu1 %v3755_v59 }
0x13f4   :  { %v3760_v60 = vpop.xlane.xlu0 %3759 }
0x13f5   :  { %v3762_v61 = vmul.f32 0.03125, %v3760_v60  ;;  %v3757_v28 = vpop.xlane.xlu1 %3756 }
0x13f6   :  { %v3761_v33 = vmul.f32 0.03125, %v3757_v28 }
0x13f7   :  { %v3764_v7 = vsub.f32 %v3754_v56, %v3762_v61 }
0x13f8   :  { %v3763_v5 = vsub.f32 %v3753_v57, %v3761_v33 }
0x13f9   :  { %v3766_v62 = vmul.f32 %v3764_v7, %v3764_v7 }
0x13fa   :  { %v3765_v63 = vmul.f32 %v3763_v5, %v3763_v5 }
0x13fb   :  { %v3770_v0 = vsel %vm141_vm0, %v3766_v62, 0.0 }
0x13fc   :  { %3771 = vadd.xlane.f32.xlu0 %v3770_v0  ;;  %v3767_v1 = vsel %vm141_vm0, %v3765_v63, 0.0 }
0x13fd   :  { %3768 = vadd.xlane.f32.xlu1 %v3767_v1 }
0x1489   :  { %v3772_v8 = vpop.xlane.xlu0 %3771 }
0x148a   :  { %v3774_v9 = vmul.f32 0.03125, %v3772_v8  ;;  %v3769_v11 = vpop.xlane.xlu1 %3768 }
0x148b   :  { %v3773_v12 = vmul.f32 0.03125, %v3769_v11 }
0x148c   :  { %v3776_v13 = vadd.f32 1e-05, %v3774_v9 }
0x148d   :  { %v3775_v14 = vadd.f32 1e-05, %v3773_v12 }
0x148e   :  { %4588 = vrsqrt.f32 %v3776_v13 }
0x148f   :  { %4590 = vrsqrt.f32 %v3775_v14 }
0x1498   :  { %v4589_v15 = vpop.eup %4588 }
0x1499   :  { %v4591_v21 = vpop.eup %4590  ;;  %v3780_v22 = vmul.f32 %v4589_v15, %v3764_v7 }
0x149a   :  { %v3779_v23 = vmul.f32 %v4591_v21, %v3763_v5 }
0x149b   :  { %v3788_v25 = vmul.f32 %v4002_v16, %v3780_v22 }
0x149c   :  { %v3787_v26 = vmul.f32 %v4002_v16, %v3779_v23 }
0x149d   :  { %v3796_v29 = vadd.f32 %v4003_v24, %v3788_v25 }
0x149e   :  { %v3795_v27 = vadd.f32 %v4003_v24, %v3787_v26 }
0x14a0   :  { %4405 = vmatprep.mubr.msk.f32.mxu1 %vm141_vm0, %v3795_v27 }
0x14a1   :  { %4406 = vmatmul.mubr.msk.f32.vlgmr.msra.gmra.mrb[44].mxu1 %vm141_vm0, %v3796_v29 }
0x1574   :  { %v4407_v30 = vpop.f32.mrb[44].mxu1 }
0x1575   :  { %v3886_v31 = vadd.f32 %v4407_v30, %v4004_v10  ;;  %v3880_v32 = vpop.f32.mrb[45].mxu1 }
0x1576   :  { %v3881_v34 = vadd.f32 %v4004_v10, %v3880_v32 }
0x1577   :  { %3890 = vst [vmem:[%s5439_s15 + $0x8] sm:$0xff] %v3886_v31 }
0x1578   :  { %3889 = vst [vmem:[%s5439_s15] sm:$0xff] %v3881_v34 }
0x1579   :  { %3895 = vsyncpa [#allocation3], 1 }
0x157a   :  { %3896 = vsyncpa [#allocation5], 1 }
0x157b   :  { %3897 = vsyncpa [#allocation8], 1 }

</bundles_post_ra>
